<compile_context>
chip_gen: v5e
topology: v5e:2x2
jax: 0.10.0
libtpu: 0.0.40
codegen_flags: <defaults>
</compile_context>

<pallas_src>
import jax
import jax.numpy as jnp
from jax.experimental import pallas as pl
from jax.experimental.pallas import tpu as pltpu

# ----------------- small synthetic configuration -----------------
T = 8            # number of frames (transformer sequence length)
C = 4            # image channels
HW = 16          # spatial size
PATCH = 8
NP = (HW // PATCH) ** 2          # patches per frame (= 4)
PDIM = C * PATCH * PATCH         # flattened patch dim (= 256)
D = 128          # input_dim / d_model
NHEAD = 4
HEAD = D // NHEAD
FF = 256         # dim_feedforward
LAYERS = 2       # num encoder layers (6 in the real default; small here)
EPS = 1e-5
WA_COLS = 3 * D + D + FF         # Wqkv | Wo | W1  -> 768 lanes


def _layernorm(x, g, b):
    mu = jnp.sum(x, axis=-1, keepdims=True) * (1.0 / D)
    xc = x - mu
    var = jnp.sum(xc * xc, axis=-1, keepdims=True) * (1.0 / D)
    return xc * jax.lax.rsqrt(var + EPS) * g + b


# ----------------- fused ViT-stub + transformer-encoder kernel -----------------
def fused_kernel(pooled_ref, wa_ref, wb_ref, slab_ref, vid_ref):
    # ---- frozen-ViT surrogate: (pre-pooled) patch embedding ----
    misc = slab_ref[LAYERS]                               # [8, 3D] f32
    bp = misc[0:1, 0:D]
    x = jnp.dot(pooled_ref[...], wb_ref[LAYERS],          # [T, PDIM] x [PDIM, D]
                preferred_element_type=jnp.float32) + bp  # [T, D] f32

    # ---- encoder layers (statically unrolled; all weights resident in VMEM) ----
    for l in range(LAYERS):
        sl = slab_ref[l]                                  # [8, 3D] f32
        bqkv = sl[0:1, :]                                 # [1, 3D] (Q part pre-scaled)
        bo, b1 = sl[1:2, 0:D], sl[1:2, D:D + FF]
        b2, g1, be1 = sl[2:3, 0:D], sl[2:3, D:2 * D], sl[2:3, 2 * D:3 * D]
        g2, be2 = sl[3:4, 0:D], sl[3:4, D:2 * D]

        # one lane-dense QKV projection: [S, D] x [D, 3D]
        qkv = jnp.dot(x.astype(jnp.bfloat16), wa_ref[l, :, 0:3 * D],
                      preferred_element_type=jnp.float32) + bqkv
        qkv = qkv.astype(jnp.bfloat16)                    # single f32->bf16 pack for q/k/v

        # per-head attention on lane slices (1/sqrt(HEAD) folded into Q at prep)
        heads = []
        for h in range(NHEAD):
            qh = qkv[:, h * HEAD:(h + 1) * HEAD]                          # [S, HEAD]
            kh = qkv[:, D + h * HEAD:D + (h + 1) * HEAD]
            vh = qkv[:, 2 * D + h * HEAD:2 * D + (h + 1) * HEAD]
            s = jax.lax.dot_general(qh, kh, (((1,), (1,)), ((), ())),
                                    preferred_element_type=jnp.float32)   # q @ k^T -> [S, S]
            s = s - jnp.max(s, axis=-1, keepdims=True)
            p = jnp.exp(s)
            p = p / jnp.sum(p, axis=-1, keepdims=True)                    # exact softmax
            heads.append(jnp.dot(p.astype(jnp.bfloat16), vh,
                                 preferred_element_type=jnp.float32))     # [S, HEAD]
        o = jnp.concatenate(heads, axis=-1).astype(jnp.bfloat16)          # [S, D]

        # one full-K output projection: [S, D] x [D, D]
        attn = jnp.dot(o, wa_ref[l, :, 3 * D:4 * D],
                       preferred_element_type=jnp.float32) + bo

        x = _layernorm(x + attn, g1, be1)                 # post-norm (PyTorch default)

        # feed-forward (ReLU)
        h1 = jnp.dot(x.astype(jnp.bfloat16), wa_ref[l, :, 4 * D:4 * D + FF],
                     preferred_element_type=jnp.float32) + b1
        h1 = jnp.maximum(h1, 0.0)
        y = jnp.dot(h1.astype(jnp.bfloat16), wb_ref[l],
                    preferred_element_type=jnp.float32) + b2
        x = _layernorm(x + y, g2, be2)

    # final encoder LayerNorm (nn.Transformer(...).encoder.norm)
    vid_ref[...] = _layernorm(x, misc[0:1, D:2 * D], misc[0:1, 2 * D:3 * D])


# ----------------- parameter / input preparation (layout-only glue) -----------------
def prepare_inputs(images, vit_params, enc_params):
    wp, bp = vit_params
    (wqkv, bqkv, wo, bo, w1, b1, w2, b2, g1, be1, g2, be2, gf, bf) = enc_params

    # patchify + per-frame mean pool (pool commutes with the linear embed -> exact)
    t, c, h, w = images.shape
    p = images.reshape(t, c, h // PATCH, PATCH, w // PATCH, PATCH)
    p = p.transpose(0, 2, 4, 1, 3, 5).reshape(t, NP, PDIM)
    pooled = jnp.mean(p, axis=1).astype(jnp.bfloat16)                     # [T, PDIM]

    # fold 1/sqrt(HEAD) into the Q projection (weights AND bias, as PyTorch scales q)
    scale = 1.0 / (HEAD ** 0.5)
    wqkv = wqkv.at[:, :, :D].multiply(scale)
    bqkv = bqkv.at[:, :, :D].multiply(scale)

    # bf16 slab A: per layer [Wqkv | Wo | W1]  -> [LAYERS, D, 768]
    wa = jnp.concatenate([wqkv, wo, w1], axis=-1).astype(jnp.bfloat16)

    # bf16 slab B: W2 per layer, plus the patch-embed weight as last entry
    wb = jnp.concatenate([w2, wp[None]], axis=0).astype(jnp.bfloat16)     # [LAYERS+1, 256, D]

    # f32 slab: per layer rows [bqkv | bo,b1 | b2,g1,be1 | g2,be2]; last entry [bp,gf,bf]
    def _row(*pieces):
        r = jnp.concatenate([v.reshape(1, -1).astype(jnp.float32) for v in pieces], axis=-1)
        return jnp.pad(r, ((0, 0), (0, 3 * D - r.shape[-1])))

    per_layer = []
    for l in range(LAYERS):
        rows = jnp.concatenate([
            _row(bqkv[l]),
            _row(bo[l], b1[l]),
            _row(b2[l], g1[l], be1[l]),
            _row(g2[l], be2[l]),
            jnp.zeros((4, 3 * D), jnp.float32),
        ], axis=0)
        per_layer.append(rows[None])
    misc = jnp.concatenate([_row(bp, gf, bf),
                            jnp.zeros((7, 3 * D), jnp.float32)], axis=0)[None]
    slab = jnp.concatenate(per_layer + [misc], axis=0)                    # [LAYERS+1, 8, 3D]

    return pooled, wa, wb, slab


def video_transformer_forward(images, vit_params, enc_params):
    pooled, wa, wb, slab = prepare_inputs(images, vit_params, enc_params)
    grid_spec = pltpu.PrefetchScalarGridSpec(
        num_scalar_prefetch=0,
        grid=(1,),   # single video; a leading "parallel" batch axis would go here
        in_specs=[
            pl.BlockSpec((T, PDIM), lambda i: (0, 0)),                    # pooled patches
            pl.BlockSpec((LAYERS, D, WA_COLS), lambda i: (0, 0, 0)),      # Wqkv|Wo|W1 slab
            pl.BlockSpec((LAYERS + 1, PDIM, D), lambda i: (0, 0, 0)),     # W2 ; Wp slab
            pl.BlockSpec((LAYERS + 1, 8, 3 * D), lambda i: (0, 0, 0)),    # bias/LN slab
        ],
        out_specs=pl.BlockSpec((T, D), lambda i: (0, 0)),                 # video_embs
    )
    video_embs = pl.pallas_call(
        fused_kernel,
        out_shape=jax.ShapeDtypeStruct((T, D), jnp.float32),
        grid_spec=grid_spec,
        compiler_params=pltpu.CompilerParams(dimension_semantics=("arbitrary",)),
    )(pooled, wa, wb, slab)
    return video_embs, jnp.mean(video_embs, axis=0)                       # ([T,D], [D])


if __name__ == "__main__":
    key = jax.random.PRNGKey(0)
    keys = jax.random.split(key, 12)

    def init(k, shape, scale=0.02):
        return (jax.random.normal(k, shape, jnp.float32) * scale).astype(jnp.float32)

    # input video: sequence of T frames, NCHW
    x = jax.random.normal(keys[0], (T, C, HW, HW), dtype=jnp.float32)

    # ViT stub parameters
    wp = init(keys[1], (PDIM, D))
    bp = init(keys[2], (1, D))

    # encoder parameters, stacked over layers, stored [in, out] for plain dots
    wqkv = init(keys[3], (LAYERS, D, 3 * D))
    bqkv = init(keys[4], (LAYERS, 1, 3 * D))
    wo = init(keys[5], (LAYERS, D, D))
    bo = init(keys[6], (LAYERS, 1, D))
    w1 = init(keys[7], (LAYERS, D, FF))
    b1 = init(keys[8], (LAYERS, 1, FF))
    w2 = init(keys[9], (LAYERS, FF, D))
    b2 = init(keys[10], (LAYERS, 1, D))
    g1 = jnp.ones((LAYERS, 1, D), jnp.float32)
    be1 = jnp.zeros((LAYERS, 1, D), jnp.float32)
    g2 = jnp.ones((LAYERS, 1, D), jnp.float32)
    be2 = jnp.zeros((LAYERS, 1, D), jnp.float32)
    gf = jnp.ones((1, D), jnp.float32)
    bf = jnp.zeros((1, D), jnp.float32)

    enc_params = (wqkv, bqkv, wo, bo, w1, b1, w2, b2, g1, be1, g2, be2, gf, bf)

    video_embs, video_mean = video_transformer_forward(x, (wp, bp), enc_params)
    jax.block_until_ready((video_embs, video_mean))
    assert video_embs.shape == (T, D) and video_mean.shape == (D,)
    print("KERNEL_OK")
</pallas_src>

<mosaic_0001>
module attributes {stable_mosaic.version = 11 : i64} {
  func.func @fused_kernel(%arg0: i32, %arg1: memref<8x256xbf16, #tpu.memory_space<vmem>>, %arg2: memref<2x128x768xbf16, #tpu.memory_space<vmem>>, %arg3: memref<3x256x128xbf16, #tpu.memory_space<vmem>>, %arg4: memref<3x8x384xf32, #tpu.memory_space<vmem>>, %arg5: memref<8x128xf32, #tpu.memory_space<vmem>>) attributes {dimension_semantics = [#tpu.dimension_semantics<arbitrary>], iteration_bounds = array<i64: 1>, scalar_prefetch = 0 : i64, scratch_operands = 0 : i64, tpu.core_type = #tpu.core_type<tc>, window_params = [{pipeline_mode = #tpu.pipeline_mode<synchronous>, transform_indices = @transform_0, window_bounds = array<i64: 8, 256>}, {pipeline_mode = #tpu.pipeline_mode<synchronous>, transform_indices = @transform_1, window_bounds = array<i64: 2, 128, 768>}, {pipeline_mode = #tpu.pipeline_mode<synchronous>, transform_indices = @transform_2, window_bounds = array<i64: 3, 256, 128>}, {pipeline_mode = #tpu.pipeline_mode<synchronous>, transform_indices = @transform_3, window_bounds = array<i64: 3, 8, 384>}, {pipeline_mode = #tpu.pipeline_mode<synchronous>, transform_indices = @transform_4, window_bounds = array<i64: 8, 128>}]} {
    %c2 = arith.constant 2 : index
    %c0 = arith.constant 0 : index
    %c0_0 = arith.constant 0 : index
    %0 = vector.load %arg4[%c2, %c0, %c0_0] : memref<3x8x384xf32, #tpu.memory_space<vmem>>, vector<1x8x384xf32>
    %1 = vector.shape_cast %0 : vector<1x8x384xf32> to vector<8x384xf32>
    %2 = vector.extract_strided_slice %1 {offsets = [0, 0], sizes = [1, 128], strides = [1, 1]} : vector<8x384xf32> to vector<1x128xf32>
    %c0_1 = arith.constant 0 : index
    %c0_2 = arith.constant 0 : index
    %3 = vector.load %arg1[%c0_1, %c0_2] : memref<8x256xbf16, #tpu.memory_space<vmem>>, vector<8x256xbf16>
    %c2_3 = arith.constant 2 : index
    %c0_4 = arith.constant 0 : index
    %c0_5 = arith.constant 0 : index
    %4 = vector.load %arg3[%c2_3, %c0_4, %c0_5] : memref<3x256x128xbf16, #tpu.memory_space<vmem>>, vector<1x256x128xbf16>
    %5 = vector.shape_cast %4 : vector<1x256x128xbf16> to vector<256x128xbf16>
    %cst = arith.constant dense<0.000000e+00> : vector<8x128xf32>
    %6 = tpu.matmul %3, %5, %cst {dimension_numbers = #tpu.dot_dimension_numbers<[1], [0], [0], [1], [0, 0, 1, 1], [], []>} : vector<8x256xbf16>, vector<256x128xbf16>, vector<8x128xf32> -> vector<8x128xf32>
    %7 = vector.broadcast %2 : vector<1x128xf32> to vector<8x128xf32>
    %8 = arith.addf %6, %7 : vector<8x128xf32>
    %c0_6 = arith.constant 0 : index
    %c0_7 = arith.constant 0 : index
    %c0_8 = arith.constant 0 : index
    %9 = vector.load %arg4[%c0_6, %c0_7, %c0_8] : memref<3x8x384xf32, #tpu.memory_space<vmem>>, vector<1x8x384xf32>
    %10 = vector.shape_cast %9 : vector<1x8x384xf32> to vector<8x384xf32>
    %11 = vector.extract_strided_slice %10 {offsets = [0, 0], sizes = [1, 384], strides = [1, 1]} : vector<8x384xf32> to vector<1x384xf32>
    %12 = vector.extract_strided_slice %10 {offsets = [1, 0], sizes = [1, 128], strides = [1, 1]} : vector<8x384xf32> to vector<1x128xf32>
    %13 = vector.extract_strided_slice %10 {offsets = [1, 128], sizes = [1, 256], strides = [1, 1]} : vector<8x384xf32> to vector<1x256xf32>
    %14 = vector.extract_strided_slice %10 {offsets = [2, 0], sizes = [1, 128], strides = [1, 1]} : vector<8x384xf32> to vector<1x128xf32>
    %15 = vector.extract_strided_slice %10 {offsets = [2, 128], sizes = [1, 128], strides = [1, 1]} : vector<8x384xf32> to vector<1x128xf32>
    %16 = vector.extract_strided_slice %10 {offsets = [2, 256], sizes = [1, 128], strides = [1, 1]} : vector<8x384xf32> to vector<1x128xf32>
    %17 = vector.extract_strided_slice %10 {offsets = [3, 0], sizes = [1, 128], strides = [1, 1]} : vector<8x384xf32> to vector<1x128xf32>
    %18 = vector.extract_strided_slice %10 {offsets = [3, 128], sizes = [1, 128], strides = [1, 1]} : vector<8x384xf32> to vector<1x128xf32>
    %19 = arith.truncf %8 : vector<8x128xf32> to vector<8x128xbf16>
    %c0_9 = arith.constant 0 : index
    %c0_10 = arith.constant 0 : index
    %c0_11 = arith.constant 0 : index
    %20 = vector.load %arg2[%c0_9, %c0_10, %c0_11] : memref<2x128x768xbf16, #tpu.memory_space<vmem>>, vector<1x128x384xbf16>
    %21 = vector.shape_cast %20 : vector<1x128x384xbf16> to vector<128x384xbf16>
    %cst_12 = arith.constant dense<0.000000e+00> : vector<8x384xf32>
    %22 = tpu.matmul %19, %21, %cst_12 {dimension_numbers = #tpu.dot_dimension_numbers<[1], [0], [0], [1], [0, 0, 1, 1], [], []>} : vector<8x128xbf16>, vector<128x384xbf16>, vector<8x384xf32> -> vector<8x384xf32>
    %23 = vector.broadcast %11 : vector<1x384xf32> to vector<8x384xf32>
    %24 = arith.addf %22, %23 : vector<8x384xf32>
    %25 = arith.truncf %24 : vector<8x384xf32> to vector<8x384xbf16>
    %26 = vector.extract_strided_slice %25 {offsets = [0, 0], sizes = [8, 32], strides = [1, 1]} : vector<8x384xbf16> to vector<8x32xbf16>
    %27 = vector.extract_strided_slice %25 {offsets = [0, 128], sizes = [8, 32], strides = [1, 1]} : vector<8x384xbf16> to vector<8x32xbf16>
    %28 = vector.extract_strided_slice %25 {offsets = [0, 256], sizes = [8, 32], strides = [1, 1]} : vector<8x384xbf16> to vector<8x32xbf16>
    %cst_13 = arith.constant dense<0.000000e+00> : vector<8x8xf32>
    %29 = tpu.matmul %26, %27, %cst_13 {dimension_numbers = #tpu.dot_dimension_numbers<[1], [1], [0], [0], [0, 0, 1, 0], [], []>} : vector<8x32xbf16>, vector<8x32xbf16>, vector<8x8xf32> -> vector<8x8xf32>
    %cst_14 = arith.constant dense<0xFF800000> : vector<8xf32>
    %30 = vector.multi_reduction <maximumf>, %29, %cst_14 [1] : vector<8x8xf32> to vector<8xf32>
    %31 = vector.shape_cast %30 : vector<8xf32> to vector<8x1xf32>
    %32 = vector.broadcast %31 : vector<8x1xf32> to vector<8x8xf32>
    %33 = arith.subf %29, %32 : vector<8x8xf32>
    %34 = math.exp %33 : vector<8x8xf32>
    %cst_15 = arith.constant dense<0.000000e+00> : vector<8xf32>
    %35 = vector.multi_reduction <add>, %34, %cst_15 [1] : vector<8x8xf32> to vector<8xf32>
    %36 = vector.shape_cast %35 : vector<8xf32> to vector<8x1xf32>
    %37 = vector.broadcast %36 : vector<8x1xf32> to vector<8x8xf32>
    %38 = arith.divf %34, %37 : vector<8x8xf32>
    %39 = arith.truncf %38 : vector<8x8xf32> to vector<8x8xbf16>
    %cst_16 = arith.constant dense<0.000000e+00> : vector<8x32xf32>
    %40 = tpu.matmul %39, %28, %cst_16 {dimension_numbers = #tpu.dot_dimension_numbers<[1], [0], [0], [1], [0, 0, 1, 1], [], []>} : vector<8x8xbf16>, vector<8x32xbf16>, vector<8x32xf32> -> vector<8x32xf32>
    %41 = vector.extract_strided_slice %25 {offsets = [0, 32], sizes = [8, 32], strides = [1, 1]} : vector<8x384xbf16> to vector<8x32xbf16>
    %42 = vector.extract_strided_slice %25 {offsets = [0, 160], sizes = [8, 32], strides = [1, 1]} : vector<8x384xbf16> to vector<8x32xbf16>
    %43 = vector.extract_strided_slice %25 {offsets = [0, 288], sizes = [8, 32], strides = [1, 1]} : vector<8x384xbf16> to vector<8x32xbf16>
    %cst_17 = arith.constant dense<0.000000e+00> : vector<8x8xf32>
    %44 = tpu.matmul %41, %42, %cst_17 {dimension_numbers = #tpu.dot_dimension_numbers<[1], [1], [0], [0], [0, 0, 1, 0], [], []>} : vector<8x32xbf16>, vector<8x32xbf16>, vector<8x8xf32> -> vector<8x8xf32>
    %cst_18 = arith.constant dense<0xFF800000> : vector<8xf32>
    %45 = vector.multi_reduction <maximumf>, %44, %cst_18 [1] : vector<8x8xf32> to vector<8xf32>
    %46 = vector.shape_cast %45 : vector<8xf32> to vector<8x1xf32>
    %47 = vector.broadcast %46 : vector<8x1xf32> to vector<8x8xf32>
    %48 = arith.subf %44, %47 : vector<8x8xf32>
    %49 = math.exp %48 : vector<8x8xf32>
    %cst_19 = arith.constant dense<0.000000e+00> : vector<8xf32>
    %50 = vector.multi_reduction <add>, %49, %cst_19 [1] : vector<8x8xf32> to vector<8xf32>
    %51 = vector.shape_cast %50 : vector<8xf32> to vector<8x1xf32>
    %52 = vector.broadcast %51 : vector<8x1xf32> to vector<8x8xf32>
    %53 = arith.divf %49, %52 : vector<8x8xf32>
    %54 = arith.truncf %53 : vector<8x8xf32> to vector<8x8xbf16>
    %cst_20 = arith.constant dense<0.000000e+00> : vector<8x32xf32>
    %55 = tpu.matmul %54, %43, %cst_20 {dimension_numbers = #tpu.dot_dimension_numbers<[1], [0], [0], [1], [0, 0, 1, 1], [], []>} : vector<8x8xbf16>, vector<8x32xbf16>, vector<8x32xf32> -> vector<8x32xf32>
    %56 = vector.extract_strided_slice %25 {offsets = [0, 64], sizes = [8, 32], strides = [1, 1]} : vector<8x384xbf16> to vector<8x32xbf16>
    %57 = vector.extract_strided_slice %25 {offsets = [0, 192], sizes = [8, 32], strides = [1, 1]} : vector<8x384xbf16> to vector<8x32xbf16>
    %58 = vector.extract_strided_slice %25 {offsets = [0, 320], sizes = [8, 32], strides = [1, 1]} : vector<8x384xbf16> to vector<8x32xbf16>
    %cst_21 = arith.constant dense<0.000000e+00> : vector<8x8xf32>
    %59 = tpu.matmul %56, %57, %cst_21 {dimension_numbers = #tpu.dot_dimension_numbers<[1], [1], [0], [0], [0, 0, 1, 0], [], []>} : vector<8x32xbf16>, vector<8x32xbf16>, vector<8x8xf32> -> vector<8x8xf32>
    %cst_22 = arith.constant dense<0xFF800000> : vector<8xf32>
    %60 = vector.multi_reduction <maximumf>, %59, %cst_22 [1] : vector<8x8xf32> to vector<8xf32>
    %61 = vector.shape_cast %60 : vector<8xf32> to vector<8x1xf32>
    %62 = vector.broadcast %61 : vector<8x1xf32> to vector<8x8xf32>
    %63 = arith.subf %59, %62 : vector<8x8xf32>
    %64 = math.exp %63 : vector<8x8xf32>
    %cst_23 = arith.constant dense<0.000000e+00> : vector<8xf32>
    %65 = vector.multi_reduction <add>, %64, %cst_23 [1] : vector<8x8xf32> to vector<8xf32>
    %66 = vector.shape_cast %65 : vector<8xf32> to vector<8x1xf32>
    %67 = vector.broadcast %66 : vector<8x1xf32> to vector<8x8xf32>
    %68 = arith.divf %64, %67 : vector<8x8xf32>
    %69 = arith.truncf %68 : vector<8x8xf32> to vector<8x8xbf16>
    %cst_24 = arith.constant dense<0.000000e+00> : vector<8x32xf32>
    %70 = tpu.matmul %69, %58, %cst_24 {dimension_numbers = #tpu.dot_dimension_numbers<[1], [0], [0], [1], [0, 0, 1, 1], [], []>} : vector<8x8xbf16>, vector<8x32xbf16>, vector<8x32xf32> -> vector<8x32xf32>
    %71 = vector.extract_strided_slice %25 {offsets = [0, 96], sizes = [8, 32], strides = [1, 1]} : vector<8x384xbf16> to vector<8x32xbf16>
    %72 = vector.extract_strided_slice %25 {offsets = [0, 224], sizes = [8, 32], strides = [1, 1]} : vector<8x384xbf16> to vector<8x32xbf16>
    %73 = vector.extract_strided_slice %25 {offsets = [0, 352], sizes = [8, 32], strides = [1, 1]} : vector<8x384xbf16> to vector<8x32xbf16>
    %cst_25 = arith.constant dense<0.000000e+00> : vector<8x8xf32>
    %74 = tpu.matmul %71, %72, %cst_25 {dimension_numbers = #tpu.dot_dimension_numbers<[1], [1], [0], [0], [0, 0, 1, 0], [], []>} : vector<8x32xbf16>, vector<8x32xbf16>, vector<8x8xf32> -> vector<8x8xf32>
    %cst_26 = arith.constant dense<0xFF800000> : vector<8xf32>
    %75 = vector.multi_reduction <maximumf>, %74, %cst_26 [1] : vector<8x8xf32> to vector<8xf32>
    %76 = vector.shape_cast %75 : vector<8xf32> to vector<8x1xf32>
    %77 = vector.broadcast %76 : vector<8x1xf32> to vector<8x8xf32>
    %78 = arith.subf %74, %77 : vector<8x8xf32>
    %79 = math.exp %78 : vector<8x8xf32>
    %cst_27 = arith.constant dense<0.000000e+00> : vector<8xf32>
    %80 = vector.multi_reduction <add>, %79, %cst_27 [1] : vector<8x8xf32> to vector<8xf32>
    %81 = vector.shape_cast %80 : vector<8xf32> to vector<8x1xf32>
    %82 = vector.broadcast %81 : vector<8x1xf32> to vector<8x8xf32>
    %83 = arith.divf %79, %82 : vector<8x8xf32>
    %84 = arith.truncf %83 : vector<8x8xf32> to vector<8x8xbf16>
    %cst_28 = arith.constant dense<0.000000e+00> : vector<8x32xf32>
    %85 = tpu.matmul %84, %73, %cst_28 {dimension_numbers = #tpu.dot_dimension_numbers<[1], [0], [0], [1], [0, 0, 1, 1], [], []>} : vector<8x8xbf16>, vector<8x32xbf16>, vector<8x32xf32> -> vector<8x32xf32>
    %86 = tpu.concatenate %40, %55, %70, %85 in 1 : vector<8x32xf32>, vector<8x32xf32>, vector<8x32xf32>, vector<8x32xf32> -> vector<8x128xf32>
    %87 = arith.truncf %86 : vector<8x128xf32> to vector<8x128xbf16>
    %c0_29 = arith.constant 0 : index
    %c0_30 = arith.constant 0 : index
    %c384 = arith.constant 384 : index
    %88 = vector.load %arg2[%c0_29, %c0_30, %c384] : memref<2x128x768xbf16, #tpu.memory_space<vmem>>, vector<1x128x128xbf16>
    %89 = vector.shape_cast %88 : vector<1x128x128xbf16> to vector<128x128xbf16>
    %cst_31 = arith.constant dense<0.000000e+00> : vector<8x128xf32>
    %90 = tpu.matmul %87, %89, %cst_31 {dimension_numbers = #tpu.dot_dimension_numbers<[1], [0], [0], [1], [0, 0, 1, 1], [], []>} : vector<8x128xbf16>, vector<128x128xbf16>, vector<8x128xf32> -> vector<8x128xf32>
    %91 = vector.broadcast %12 : vector<1x128xf32> to vector<8x128xf32>
    %92 = arith.addf %90, %91 : vector<8x128xf32>
    %93 = arith.addf %8, %92 : vector<8x128xf32>
    %cst_32 = arith.constant dense<0.000000e+00> : vector<8xf32>
    %94 = vector.multi_reduction <add>, %93, %cst_32 [1] : vector<8x128xf32> to vector<8xf32>
    %95 = vector.shape_cast %94 : vector<8xf32> to vector<8x1xf32>
    %cst_33 = arith.constant 7.812500e-03 : f32
    %96 = vector.broadcast %cst_33 : f32 to vector<8x1xf32>
    %97 = arith.mulf %95, %96 : vector<8x1xf32>
    %98 = vector.broadcast %97 : vector<8x1xf32> to vector<8x128xf32>
    %99 = arith.subf %93, %98 : vector<8x128xf32>
    %100 = arith.mulf %99, %99 : vector<8x128xf32>
    %cst_34 = arith.constant dense<0.000000e+00> : vector<8xf32>
    %101 = vector.multi_reduction <add>, %100, %cst_34 [1] : vector<8x128xf32> to vector<8xf32>
    %102 = vector.shape_cast %101 : vector<8xf32> to vector<8x1xf32>
    %cst_35 = arith.constant 7.812500e-03 : f32
    %103 = vector.broadcast %cst_35 : f32 to vector<8x1xf32>
    %104 = arith.mulf %102, %103 : vector<8x1xf32>
    %cst_36 = arith.constant 9.99999974E-6 : f32
    %105 = vector.broadcast %cst_36 : f32 to vector<8x1xf32>
    %106 = arith.addf %104, %105 : vector<8x1xf32>
    %107 = math.rsqrt %106 : vector<8x1xf32>
    %108 = vector.broadcast %107 : vector<8x1xf32> to vector<8x128xf32>
    %109 = arith.mulf %99, %108 : vector<8x128xf32>
    %110 = vector.broadcast %15 : vector<1x128xf32> to vector<8x128xf32>
    %111 = arith.mulf %109, %110 : vector<8x128xf32>
    %112 = vector.broadcast %16 : vector<1x128xf32> to vector<8x128xf32>
    %113 = arith.addf %111, %112 : vector<8x128xf32>
    %114 = arith.truncf %113 : vector<8x128xf32> to vector<8x128xbf16>
    %c0_37 = arith.constant 0 : index
    %c0_38 = arith.constant 0 : index
    %c512 = arith.constant 512 : index
    %115 = vector.load %arg2[%c0_37, %c0_38, %c512] : memref<2x128x768xbf16, #tpu.memory_space<vmem>>, vector<1x128x256xbf16>
    %116 = vector.shape_cast %115 : vector<1x128x256xbf16> to vector<128x256xbf16>
    %cst_39 = arith.constant dense<0.000000e+00> : vector<8x256xf32>
    %117 = tpu.matmul %114, %116, %cst_39 {dimension_numbers = #tpu.dot_dimension_numbers<[1], [0], [0], [1], [0, 0, 1, 1], [], []>} : vector<8x128xbf16>, vector<128x256xbf16>, vector<8x256xf32> -> vector<8x256xf32>
    %118 = vector.broadcast %13 : vector<1x256xf32> to vector<8x256xf32>
    %119 = arith.addf %117, %118 : vector<8x256xf32>
    %cst_40 = arith.constant 0.000000e+00 : f32
    %120 = vector.broadcast %cst_40 : f32 to vector<8x256xf32>
    %121 = arith.maximumf %119, %120 : vector<8x256xf32>
    %122 = arith.truncf %121 : vector<8x256xf32> to vector<8x256xbf16>
    %c0_41 = arith.constant 0 : index
    %c0_42 = arith.constant 0 : index
    %c0_43 = arith.constant 0 : index
    %123 = vector.load %arg3[%c0_41, %c0_42, %c0_43] : memref<3x256x128xbf16, #tpu.memory_space<vmem>>, vector<1x256x128xbf16>
    %124 = vector.shape_cast %123 : vector<1x256x128xbf16> to vector<256x128xbf16>
    %cst_44 = arith.constant dense<0.000000e+00> : vector<8x128xf32>
    %125 = tpu.matmul %122, %124, %cst_44 {dimension_numbers = #tpu.dot_dimension_numbers<[1], [0], [0], [1], [0, 0, 1, 1], [], []>} : vector<8x256xbf16>, vector<256x128xbf16>, vector<8x128xf32> -> vector<8x128xf32>
    %126 = vector.broadcast %14 : vector<1x128xf32> to vector<8x128xf32>
    %127 = arith.addf %125, %126 : vector<8x128xf32>
    %128 = arith.addf %113, %127 : vector<8x128xf32>
    %cst_45 = arith.constant dense<0.000000e+00> : vector<8xf32>
    %129 = vector.multi_reduction <add>, %128, %cst_45 [1] : vector<8x128xf32> to vector<8xf32>
    %130 = vector.shape_cast %129 : vector<8xf32> to vector<8x1xf32>
    %cst_46 = arith.constant 7.812500e-03 : f32
    %131 = vector.broadcast %cst_46 : f32 to vector<8x1xf32>
    %132 = arith.mulf %130, %131 : vector<8x1xf32>
    %133 = vector.broadcast %132 : vector<8x1xf32> to vector<8x128xf32>
    %134 = arith.subf %128, %133 : vector<8x128xf32>
    %135 = arith.mulf %134, %134 : vector<8x128xf32>
    %cst_47 = arith.constant dense<0.000000e+00> : vector<8xf32>
    %136 = vector.multi_reduction <add>, %135, %cst_47 [1] : vector<8x128xf32> to vector<8xf32>
    %137 = vector.shape_cast %136 : vector<8xf32> to vector<8x1xf32>
    %cst_48 = arith.constant 7.812500e-03 : f32
    %138 = vector.broadcast %cst_48 : f32 to vector<8x1xf32>
    %139 = arith.mulf %137, %138 : vector<8x1xf32>
    %cst_49 = arith.constant 9.99999974E-6 : f32
    %140 = vector.broadcast %cst_49 : f32 to vector<8x1xf32>
    %141 = arith.addf %139, %140 : vector<8x1xf32>
    %142 = math.rsqrt %141 : vector<8x1xf32>
    %143 = vector.broadcast %142 : vector<8x1xf32> to vector<8x128xf32>
    %144 = arith.mulf %134, %143 : vector<8x128xf32>
    %145 = vector.broadcast %17 : vector<1x128xf32> to vector<8x128xf32>
    %146 = arith.mulf %144, %145 : vector<8x128xf32>
    %147 = vector.broadcast %18 : vector<1x128xf32> to vector<8x128xf32>
    %148 = arith.addf %146, %147 : vector<8x128xf32>
    %c1 = arith.constant 1 : index
    %c0_50 = arith.constant 0 : index
    %c0_51 = arith.constant 0 : index
    %149 = vector.load %arg4[%c1, %c0_50, %c0_51] : memref<3x8x384xf32, #tpu.memory_space<vmem>>, vector<1x8x384xf32>
    %150 = vector.shape_cast %149 : vector<1x8x384xf32> to vector<8x384xf32>
    %151 = vector.extract_strided_slice %150 {offsets = [0, 0], sizes = [1, 384], strides = [1, 1]} : vector<8x384xf32> to vector<1x384xf32>
    %152 = vector.extract_strided_slice %150 {offsets = [1, 0], sizes = [1, 128], strides = [1, 1]} : vector<8x384xf32> to vector<1x128xf32>
    %153 = vector.extract_strided_slice %150 {offsets = [1, 128], sizes = [1, 256], strides = [1, 1]} : vector<8x384xf32> to vector<1x256xf32>
    %154 = vector.extract_strided_slice %150 {offsets = [2, 0], sizes = [1, 128], strides = [1, 1]} : vector<8x384xf32> to vector<1x128xf32>
    %155 = vector.extract_strided_slice %150 {offsets = [2, 128], sizes = [1, 128], strides = [1, 1]} : vector<8x384xf32> to vector<1x128xf32>
    %156 = vector.extract_strided_slice %150 {offsets = [2, 256], sizes = [1, 128], strides = [1, 1]} : vector<8x384xf32> to vector<1x128xf32>
    %157 = vector.extract_strided_slice %150 {offsets = [3, 0], sizes = [1, 128], strides = [1, 1]} : vector<8x384xf32> to vector<1x128xf32>
    %158 = vector.extract_strided_slice %150 {offsets = [3, 128], sizes = [1, 128], strides = [1, 1]} : vector<8x384xf32> to vector<1x128xf32>
    %159 = arith.truncf %148 : vector<8x128xf32> to vector<8x128xbf16>
    %c1_52 = arith.constant 1 : index
    %c0_53 = arith.constant 0 : index
    %c0_54 = arith.constant 0 : index
    %160 = vector.load %arg2[%c1_52, %c0_53, %c0_54] : memref<2x128x768xbf16, #tpu.memory_space<vmem>>, vector<1x128x384xbf16>
    %161 = vector.shape_cast %160 : vector<1x128x384xbf16> to vector<128x384xbf16>
    %cst_55 = arith.constant dense<0.000000e+00> : vector<8x384xf32>
    %162 = tpu.matmul %159, %161, %cst_55 {dimension_numbers = #tpu.dot_dimension_numbers<[1], [0], [0], [1], [0, 0, 1, 1], [], []>} : vector<8x128xbf16>, vector<128x384xbf16>, vector<8x384xf32> -> vector<8x384xf32>
    %163 = vector.broadcast %151 : vector<1x384xf32> to vector<8x384xf32>
    %164 = arith.addf %162, %163 : vector<8x384xf32>
    %165 = arith.truncf %164 : vector<8x384xf32> to vector<8x384xbf16>
    %166 = vector.extract_strided_slice %165 {offsets = [0, 0], sizes = [8, 32], strides = [1, 1]} : vector<8x384xbf16> to vector<8x32xbf16>
    %167 = vector.extract_strided_slice %165 {offsets = [0, 128], sizes = [8, 32], strides = [1, 1]} : vector<8x384xbf16> to vector<8x32xbf16>
    %168 = vector.extract_strided_slice %165 {offsets = [0, 256], sizes = [8, 32], strides = [1, 1]} : vector<8x384xbf16> to vector<8x32xbf16>
    %cst_56 = arith.constant dense<0.000000e+00> : vector<8x8xf32>
    %169 = tpu.matmul %166, %167, %cst_56 {dimension_numbers = #tpu.dot_dimension_numbers<[1], [1], [0], [0], [0, 0, 1, 0], [], []>} : vector<8x32xbf16>, vector<8x32xbf16>, vector<8x8xf32> -> vector<8x8xf32>
    %cst_57 = arith.constant dense<0xFF800000> : vector<8xf32>
    %170 = vector.multi_reduction <maximumf>, %169, %cst_57 [1] : vector<8x8xf32> to vector<8xf32>
    %171 = vector.shape_cast %170 : vector<8xf32> to vector<8x1xf32>
    %172 = vector.broadcast %171 : vector<8x1xf32> to vector<8x8xf32>
    %173 = arith.subf %169, %172 : vector<8x8xf32>
    %174 = math.exp %173 : vector<8x8xf32>
    %cst_58 = arith.constant dense<0.000000e+00> : vector<8xf32>
    %175 = vector.multi_reduction <add>, %174, %cst_58 [1] : vector<8x8xf32> to vector<8xf32>
    %176 = vector.shape_cast %175 : vector<8xf32> to vector<8x1xf32>
    %177 = vector.broadcast %176 : vector<8x1xf32> to vector<8x8xf32>
    %178 = arith.divf %174, %177 : vector<8x8xf32>
    %179 = arith.truncf %178 : vector<8x8xf32> to vector<8x8xbf16>
    %cst_59 = arith.constant dense<0.000000e+00> : vector<8x32xf32>
    %180 = tpu.matmul %179, %168, %cst_59 {dimension_numbers = #tpu.dot_dimension_numbers<[1], [0], [0], [1], [0, 0, 1, 1], [], []>} : vector<8x8xbf16>, vector<8x32xbf16>, vector<8x32xf32> -> vector<8x32xf32>
    %181 = vector.extract_strided_slice %165 {offsets = [0, 32], sizes = [8, 32], strides = [1, 1]} : vector<8x384xbf16> to vector<8x32xbf16>
    %182 = vector.extract_strided_slice %165 {offsets = [0, 160], sizes = [8, 32], strides = [1, 1]} : vector<8x384xbf16> to vector<8x32xbf16>
    %183 = vector.extract_strided_slice %165 {offsets = [0, 288], sizes = [8, 32], strides = [1, 1]} : vector<8x384xbf16> to vector<8x32xbf16>
    %cst_60 = arith.constant dense<0.000000e+00> : vector<8x8xf32>
    %184 = tpu.matmul %181, %182, %cst_60 {dimension_numbers = #tpu.dot_dimension_numbers<[1], [1], [0], [0], [0, 0, 1, 0], [], []>} : vector<8x32xbf16>, vector<8x32xbf16>, vector<8x8xf32> -> vector<8x8xf32>
    %cst_61 = arith.constant dense<0xFF800000> : vector<8xf32>
    %185 = vector.multi_reduction <maximumf>, %184, %cst_61 [1] : vector<8x8xf32> to vector<8xf32>
    %186 = vector.shape_cast %185 : vector<8xf32> to vector<8x1xf32>
    %187 = vector.broadcast %186 : vector<8x1xf32> to vector<8x8xf32>
    %188 = arith.subf %184, %187 : vector<8x8xf32>
    %189 = math.exp %188 : vector<8x8xf32>
    %cst_62 = arith.constant dense<0.000000e+00> : vector<8xf32>
    %190 = vector.multi_reduction <add>, %189, %cst_62 [1] : vector<8x8xf32> to vector<8xf32>
    %191 = vector.shape_cast %190 : vector<8xf32> to vector<8x1xf32>
    %192 = vector.broadcast %191 : vector<8x1xf32> to vector<8x8xf32>
    %193 = arith.divf %189, %192 : vector<8x8xf32>
    %194 = arith.truncf %193 : vector<8x8xf32> to vector<8x8xbf16>
    %cst_63 = arith.constant dense<0.000000e+00> : vector<8x32xf32>
    %195 = tpu.matmul %194, %183, %cst_63 {dimension_numbers = #tpu.dot_dimension_numbers<[1], [0], [0], [1], [0, 0, 1, 1], [], []>} : vector<8x8xbf16>, vector<8x32xbf16>, vector<8x32xf32> -> vector<8x32xf32>
    %196 = vector.extract_strided_slice %165 {offsets = [0, 64], sizes = [8, 32], strides = [1, 1]} : vector<8x384xbf16> to vector<8x32xbf16>
    %197 = vector.extract_strided_slice %165 {offsets = [0, 192], sizes = [8, 32], strides = [1, 1]} : vector<8x384xbf16> to vector<8x32xbf16>
    %198 = vector.extract_strided_slice %165 {offsets = [0, 320], sizes = [8, 32], strides = [1, 1]} : vector<8x384xbf16> to vector<8x32xbf16>
    %cst_64 = arith.constant dense<0.000000e+00> : vector<8x8xf32>
    %199 = tpu.matmul %196, %197, %cst_64 {dimension_numbers = #tpu.dot_dimension_numbers<[1], [1], [0], [0], [0, 0, 1, 0], [], []>} : vector<8x32xbf16>, vector<8x32xbf16>, vector<8x8xf32> -> vector<8x8xf32>
    %cst_65 = arith.constant dense<0xFF800000> : vector<8xf32>
    %200 = vector.multi_reduction <maximumf>, %199, %cst_65 [1] : vector<8x8xf32> to vector<8xf32>
    %201 = vector.shape_cast %200 : vector<8xf32> to vector<8x1xf32>
    %202 = vector.broadcast %201 : vector<8x1xf32> to vector<8x8xf32>
    %203 = arith.subf %199, %202 : vector<8x8xf32>
    %204 = math.exp %203 : vector<8x8xf32>
    %cst_66 = arith.constant dense<0.000000e+00> : vector<8xf32>
    %205 = vector.multi_reduction <add>, %204, %cst_66 [1] : vector<8x8xf32> to vector<8xf32>
    %206 = vector.shape_cast %205 : vector<8xf32> to vector<8x1xf32>
    %207 = vector.broadcast %206 : vector<8x1xf32> to vector<8x8xf32>
    %208 = arith.divf %204, %207 : vector<8x8xf32>
    %209 = arith.truncf %208 : vector<8x8xf32> to vector<8x8xbf16>
    %cst_67 = arith.constant dense<0.000000e+00> : vector<8x32xf32>
    %210 = tpu.matmul %209, %198, %cst_67 {dimension_numbers = #tpu.dot_dimension_numbers<[1], [0], [0], [1], [0, 0, 1, 1], [], []>} : vector<8x8xbf16>, vector<8x32xbf16>, vector<8x32xf32> -> vector<8x32xf32>
    %211 = vector.extract_strided_slice %165 {offsets = [0, 96], sizes = [8, 32], strides = [1, 1]} : vector<8x384xbf16> to vector<8x32xbf16>
    %212 = vector.extract_strided_slice %165 {offsets = [0, 224], sizes = [8, 32], strides = [1, 1]} : vector<8x384xbf16> to vector<8x32xbf16>
    %213 = vector.extract_strided_slice %165 {offsets = [0, 352], sizes = [8, 32], strides = [1, 1]} : vector<8x384xbf16> to vector<8x32xbf16>
    %cst_68 = arith.constant dense<0.000000e+00> : vector<8x8xf32>
    %214 = tpu.matmul %211, %212, %cst_68 {dimension_numbers = #tpu.dot_dimension_numbers<[1], [1], [0], [0], [0, 0, 1, 0], [], []>} : vector<8x32xbf16>, vector<8x32xbf16>, vector<8x8xf32> -> vector<8x8xf32>
    %cst_69 = arith.constant dense<0xFF800000> : vector<8xf32>
    %215 = vector.multi_reduction <maximumf>, %214, %cst_69 [1] : vector<8x8xf32> to vector<8xf32>
    %216 = vector.shape_cast %215 : vector<8xf32> to vector<8x1xf32>
    %217 = vector.broadcast %216 : vector<8x1xf32> to vector<8x8xf32>
    %218 = arith.subf %214, %217 : vector<8x8xf32>
    %219 = math.exp %218 : vector<8x8xf32>
    %cst_70 = arith.constant dense<0.000000e+00> : vector<8xf32>
    %220 = vector.multi_reduction <add>, %219, %cst_70 [1] : vector<8x8xf32> to vector<8xf32>
    %221 = vector.shape_cast %220 : vector<8xf32> to vector<8x1xf32>
    %222 = vector.broadcast %221 : vector<8x1xf32> to vector<8x8xf32>
    %223 = arith.divf %219, %222 : vector<8x8xf32>
    %224 = arith.truncf %223 : vector<8x8xf32> to vector<8x8xbf16>
    %cst_71 = arith.constant dense<0.000000e+00> : vector<8x32xf32>
    %225 = tpu.matmul %224, %213, %cst_71 {dimension_numbers = #tpu.dot_dimension_numbers<[1], [0], [0], [1], [0, 0, 1, 1], [], []>} : vector<8x8xbf16>, vector<8x32xbf16>, vector<8x32xf32> -> vector<8x32xf32>
    %226 = tpu.concatenate %180, %195, %210, %225 in 1 : vector<8x32xf32>, vector<8x32xf32>, vector<8x32xf32>, vector<8x32xf32> -> vector<8x128xf32>
    %227 = arith.truncf %226 : vector<8x128xf32> to vector<8x128xbf16>
    %c1_72 = arith.constant 1 : index
    %c0_73 = arith.constant 0 : index
    %c384_74 = arith.constant 384 : index
    %228 = vector.load %arg2[%c1_72, %c0_73, %c384_74] : memref<2x128x768xbf16, #tpu.memory_space<vmem>>, vector<1x128x128xbf16>
    %229 = vector.shape_cast %228 : vector<1x128x128xbf16> to vector<128x128xbf16>
    %cst_75 = arith.constant dense<0.000000e+00> : vector<8x128xf32>
    %230 = tpu.matmul %227, %229, %cst_75 {dimension_numbers = #tpu.dot_dimension_numbers<[1], [0], [0], [1], [0, 0, 1, 1], [], []>} : vector<8x128xbf16>, vector<128x128xbf16>, vector<8x128xf32> -> vector<8x128xf32>
    %231 = vector.broadcast %152 : vector<1x128xf32> to vector<8x128xf32>
    %232 = arith.addf %230, %231 : vector<8x128xf32>
    %233 = arith.addf %148, %232 : vector<8x128xf32>
    %cst_76 = arith.constant dense<0.000000e+00> : vector<8xf32>
    %234 = vector.multi_reduction <add>, %233, %cst_76 [1] : vector<8x128xf32> to vector<8xf32>
    %235 = vector.shape_cast %234 : vector<8xf32> to vector<8x1xf32>
    %cst_77 = arith.constant 7.812500e-03 : f32
    %236 = vector.broadcast %cst_77 : f32 to vector<8x1xf32>
    %237 = arith.mulf %235, %236 : vector<8x1xf32>
    %238 = vector.broadcast %237 : vector<8x1xf32> to vector<8x128xf32>
    %239 = arith.subf %233, %238 : vector<8x128xf32>
    %240 = arith.mulf %239, %239 : vector<8x128xf32>
    %cst_78 = arith.constant dense<0.000000e+00> : vector<8xf32>
    %241 = vector.multi_reduction <add>, %240, %cst_78 [1] : vector<8x128xf32> to vector<8xf32>
    %242 = vector.shape_cast %241 : vector<8xf32> to vector<8x1xf32>
    %cst_79 = arith.constant 7.812500e-03 : f32
    %243 = vector.broadcast %cst_79 : f32 to vector<8x1xf32>
    %244 = arith.mulf %242, %243 : vector<8x1xf32>
    %cst_80 = arith.constant 9.99999974E-6 : f32
    %245 = vector.broadcast %cst_80 : f32 to vector<8x1xf32>
    %246 = arith.addf %244, %245 : vector<8x1xf32>
    %247 = math.rsqrt %246 : vector<8x1xf32>
    %248 = vector.broadcast %247 : vector<8x1xf32> to vector<8x128xf32>
    %249 = arith.mulf %239, %248 : vector<8x128xf32>
    %250 = vector.broadcast %155 : vector<1x128xf32> to vector<8x128xf32>
    %251 = arith.mulf %249, %250 : vector<8x128xf32>
    %252 = vector.broadcast %156 : vector<1x128xf32> to vector<8x128xf32>
    %253 = arith.addf %251, %252 : vector<8x128xf32>
    %254 = arith.truncf %253 : vector<8x128xf32> to vector<8x128xbf16>
    %c1_81 = arith.constant 1 : index
    %c0_82 = arith.constant 0 : index
    %c512_83 = arith.constant 512 : index
    %255 = vector.load %arg2[%c1_81, %c0_82, %c512_83] : memref<2x128x768xbf16, #tpu.memory_space<vmem>>, vector<1x128x256xbf16>
    %256 = vector.shape_cast %255 : vector<1x128x256xbf16> to vector<128x256xbf16>
    %cst_84 = arith.constant dense<0.000000e+00> : vector<8x256xf32>
    %257 = tpu.matmul %254, %256, %cst_84 {dimension_numbers = #tpu.dot_dimension_numbers<[1], [0], [0], [1], [0, 0, 1, 1], [], []>} : vector<8x128xbf16>, vector<128x256xbf16>, vector<8x256xf32> -> vector<8x256xf32>
    %258 = vector.broadcast %153 : vector<1x256xf32> to vector<8x256xf32>
    %259 = arith.addf %257, %258 : vector<8x256xf32>
    %cst_85 = arith.constant 0.000000e+00 : f32
    %260 = vector.broadcast %cst_85 : f32 to vector<8x256xf32>
    %261 = arith.maximumf %259, %260 : vector<8x256xf32>
    %262 = arith.truncf %261 : vector<8x256xf32> to vector<8x256xbf16>
    %c1_86 = arith.constant 1 : index
    %c0_87 = arith.constant 0 : index
    %c0_88 = arith.constant 0 : index
    %263 = vector.load %arg3[%c1_86, %c0_87, %c0_88] : memref<3x256x128xbf16, #tpu.memory_space<vmem>>, vector<1x256x128xbf16>
    %264 = vector.shape_cast %263 : vector<1x256x128xbf16> to vector<256x128xbf16>
    %cst_89 = arith.constant dense<0.000000e+00> : vector<8x128xf32>
    %265 = tpu.matmul %262, %264, %cst_89 {dimension_numbers = #tpu.dot_dimension_numbers<[1], [0], [0], [1], [0, 0, 1, 1], [], []>} : vector<8x256xbf16>, vector<256x128xbf16>, vector<8x128xf32> -> vector<8x128xf32>
    %266 = vector.broadcast %154 : vector<1x128xf32> to vector<8x128xf32>
    %267 = arith.addf %265, %266 : vector<8x128xf32>
    %268 = arith.addf %253, %267 : vector<8x128xf32>
    %cst_90 = arith.constant dense<0.000000e+00> : vector<8xf32>
    %269 = vector.multi_reduction <add>, %268, %cst_90 [1] : vector<8x128xf32> to vector<8xf32>
    %270 = vector.shape_cast %269 : vector<8xf32> to vector<8x1xf32>
    %cst_91 = arith.constant 7.812500e-03 : f32
    %271 = vector.broadcast %cst_91 : f32 to vector<8x1xf32>
    %272 = arith.mulf %270, %271 : vector<8x1xf32>
    %273 = vector.broadcast %272 : vector<8x1xf32> to vector<8x128xf32>
    %274 = arith.subf %268, %273 : vector<8x128xf32>
    %275 = arith.mulf %274, %274 : vector<8x128xf32>
    %cst_92 = arith.constant dense<0.000000e+00> : vector<8xf32>
    %276 = vector.multi_reduction <add>, %275, %cst_92 [1] : vector<8x128xf32> to vector<8xf32>
    %277 = vector.shape_cast %276 : vector<8xf32> to vector<8x1xf32>
    %cst_93 = arith.constant 7.812500e-03 : f32
    %278 = vector.broadcast %cst_93 : f32 to vector<8x1xf32>
    %279 = arith.mulf %277, %278 : vector<8x1xf32>
    %cst_94 = arith.constant 9.99999974E-6 : f32
    %280 = vector.broadcast %cst_94 : f32 to vector<8x1xf32>
    %281 = arith.addf %279, %280 : vector<8x1xf32>
    %282 = math.rsqrt %281 : vector<8x1xf32>
    %283 = vector.broadcast %282 : vector<8x1xf32> to vector<8x128xf32>
    %284 = arith.mulf %274, %283 : vector<8x128xf32>
    %285 = vector.broadcast %157 : vector<1x128xf32> to vector<8x128xf32>
    %286 = arith.mulf %284, %285 : vector<8x128xf32>
    %287 = vector.broadcast %158 : vector<1x128xf32> to vector<8x128xf32>
    %288 = arith.addf %286, %287 : vector<8x128xf32>
    %289 = vector.extract_strided_slice %1 {offsets = [0, 128], sizes = [1, 128], strides = [1, 1]} : vector<8x384xf32> to vector<1x128xf32>
    %290 = vector.extract_strided_slice %1 {offsets = [0, 256], sizes = [1, 128], strides = [1, 1]} : vector<8x384xf32> to vector<1x128xf32>
    %cst_95 = arith.constant dense<0.000000e+00> : vector<8xf32>
    %291 = vector.multi_reduction <add>, %288, %cst_95 [1] : vector<8x128xf32> to vector<8xf32>
    %292 = vector.shape_cast %291 : vector<8xf32> to vector<8x1xf32>
    %cst_96 = arith.constant 7.812500e-03 : f32
    %293 = vector.broadcast %cst_96 : f32 to vector<8x1xf32>
    %294 = arith.mulf %292, %293 : vector<8x1xf32>
    %295 = vector.broadcast %294 : vector<8x1xf32> to vector<8x128xf32>
    %296 = arith.subf %288, %295 : vector<8x128xf32>
    %297 = arith.mulf %296, %296 : vector<8x128xf32>
    %cst_97 = arith.constant dense<0.000000e+00> : vector<8xf32>
    %298 = vector.multi_reduction <add>, %297, %cst_97 [1] : vector<8x128xf32> to vector<8xf32>
    %299 = vector.shape_cast %298 : vector<8xf32> to vector<8x1xf32>
    %cst_98 = arith.constant 7.812500e-03 : f32
    %300 = vector.broadcast %cst_98 : f32 to vector<8x1xf32>
    %301 = arith.mulf %299, %300 : vector<8x1xf32>
    %cst_99 = arith.constant 9.99999974E-6 : f32
    %302 = vector.broadcast %cst_99 : f32 to vector<8x1xf32>
    %303 = arith.addf %301, %302 : vector<8x1xf32>
    %304 = math.rsqrt %303 : vector<8x1xf32>
    %305 = vector.broadcast %304 : vector<8x1xf32> to vector<8x128xf32>
    %306 = arith.mulf %296, %305 : vector<8x128xf32>
    %307 = vector.broadcast %289 : vector<1x128xf32> to vector<8x128xf32>
    %308 = arith.mulf %306, %307 : vector<8x128xf32>
    %309 = vector.broadcast %290 : vector<1x128xf32> to vector<8x128xf32>
    %310 = arith.addf %308, %309 : vector<8x128xf32>
    %c0_100 = arith.constant 0 : index
    %c0_101 = arith.constant 0 : index
    %311 = vector.load %arg5[%c0_100, %c0_101] : memref<8x128xf32, #tpu.memory_space<vmem>>, vector<8x128xf32>
    tpu.vector_store %arg5[%c0_100, %c0_101], %310 {strides = array<i32>} : memref<8x128xf32, #tpu.memory_space<vmem>>, vector<8x128xf32>,
    return
  }
  func.func @transform_0(%arg0: i32) -> (i32, i32) {
    %c0_i32 = arith.constant 0 : i32
    %c0_i32_0 = arith.constant 0 : i32
    %c0_i32_1 = arith.constant 0 : i32
    return %c0_i32, %c0_i32_0 : i32, i32
  }
  func.func @transform_1(%arg0: i32) -> (i32, i32, i32) {
    %c0_i32 = arith.constant 0 : i32
    %c0_i32_0 = arith.constant 0 : i32
    %c0_i32_1 = arith.constant 0 : i32
    %c0_i32_2 = arith.constant 0 : i32
    return %c0_i32, %c0_i32_0, %c0_i32_1 : i32, i32, i32
  }
  func.func @transform_2(%arg0: i32) -> (i32, i32, i32) {
    %c0_i32 = arith.constant 0 : i32
    %c0_i32_0 = arith.constant 0 : i32
    %c0_i32_1 = arith.constant 0 : i32
    %c0_i32_2 = arith.constant 0 : i32
    return %c0_i32, %c0_i32_0, %c0_i32_1 : i32, i32, i32
  }
  func.func @transform_3(%arg0: i32) -> (i32, i32, i32) {
    %c0_i32 = arith.constant 0 : i32
    %c0_i32_0 = arith.constant 0 : i32
    %c0_i32_1 = arith.constant 0 : i32
    %c0_i32_2 = arith.constant 0 : i32
    return %c0_i32, %c0_i32_0, %c0_i32_1 : i32, i32, i32
  }
  func.func @transform_4(%arg0: i32) -> (i32, i32) {
    %c0_i32 = arith.constant 0 : i32
    %c0_i32_0 = arith.constant 0 : i32
    %c0_i32_1 = arith.constant 0 : i32
    return %c0_i32, %c0_i32_0 : i32, i32
  }
}

</mosaic_0001>

<bundles_post_ra>
// kernel: tpu_custom_call.1
= control target key start
LH: loop header
LB: loop body
LE: loop exit
PB: predicated region body
PF: predicated region fallthrough
CT: control target
= control target key end

     0   :  { %9 = vsyncpa [#allocation3], 0  ;;  %s3262_s0 = inlined_call_operand.hbm [shape: bf16[8,256], index: 0, kind: input, shape index: {}]   ;;  %s3263_s1 = inlined_call_operand.hbm [shape: bf16[2,128,768], index: 1, kind: input, shape index: {}]   ;;  %s3264_s2 = inlined_call_operand.hbm [shape: bf16[3,256,128], index: 2, kind: input, shape index: {}]   ;;  %s3265_s3 = inlined_call_operand.hbm [shape: f32[3,8,384], index: 3, kind: input, shape index: {}]   ;;  %s3266_s4 = inlined_call_operand.hbm [shape: f32[8,128], index: 4, kind: output, shape index: {}]  }
   0x1   :  { %10 = vsyncpa [#allocation6], 0 }
   0x2   :  { %11 = vsyncpa [#allocation9], 0  ;;  %s28_s17 = sshll.u32 %s3263_s1, 4  ;;  %s29_s17 = int_to_ptr.hbm [resolvable:$true] %s28_s17 }
   0x3   :  { %12 = vsyncpa [#allocation4], 0  ;;  %s3045_s18 = smov [#allocation5]   ;;  %s18_s22 = sshll.u32 %s3262_s0, 4  ;;  %s19_s22 = int_to_ptr.hbm [resolvable:$true] %s18_s22 }
   0x4   :  { %s30_s19 = sshll.u32 %s3045_s18, 4  ;;  %s3046_s23 = smov 384   ;;  %s31_s19 = int_to_ptr.vmem [resolvable:$true] %s30_s19 }
   0x5   :  { %s3047_s24 = smov 24   ;;  %s3048_s25 = smov [#allocation2]  }
   0x6   :  { %36 = dma.hbm_to_vmem [thread:$0]  %s29_s17, 12288, %s31_s19, [#allocation6], %s3046_s23, %s3046_s23, %s3047_s24  }
   0x7   :  { %s20_s26 = sshll.u32 %s3048_s25, 4  ;;  %s41_s29 = sshll.u32 %s3264_s2, 4  ;;  %s21_s26 = int_to_ptr.vmem [resolvable:$true] %s20_s26  ;;  %s42_s29 = int_to_ptr.hbm [resolvable:$true] %s41_s29 }
   0x8   :  { %23 = dma.hbm_to_vmem [thread:$0]  %s19_s22, 128, %s21_s26, [#allocation3]  }
   0x9   :  { %s3049_s1 = smov [#allocation7]   ;;  %s54_s0 = sshll.u32 %s3265_s3, 4  ;;  %s55_s0 = int_to_ptr.hbm [resolvable:$true] %s54_s0 }
   0xa   :  { %s43_s30 = sshll.u32 %s3049_s1, 4  ;;  %s3050_s7 = smov 64   ;;  %s44_s30 = int_to_ptr.vmem [resolvable:$true] %s43_s30 }
   0xb   :  { %s3051_s8 = smov 4   ;;  %s3052_s9 = smov [#allocation8]  }
   0xc   :  { %49 = dma.hbm_to_vmem [thread:$0]  %s42_s29, 6144, %s44_s30, [#allocation6], %s3050_s7, %s3050_s7, %s3051_s8  }
   0xd   :  { %s56_s10 = sshll.u32 %s3052_s9, 4  ;;  %s57_s10 = int_to_ptr.vmem [resolvable:$true] %s56_s10 }
   0xe   :  { %62 = dma.hbm_to_vmem [thread:$0]  %s55_s0, 1152, %s57_s10, [#allocation9], %s3046_s23, %s3046_s23, %s3047_s24  }
   0xf   :  { %3037 = dma.done.wait [#allocation3], 128  }
  0x10   :  { %3038 = vsyncadd [#allocation3], 4294967168 }
  0x11   :  { %3039 = dma.done.wait [#allocation6], 18432  }
  0x12   :  { %3040 = vsyncadd [#allocation6], 4294948864 }
  0x13   :  { %3041 = dma.done.wait [#allocation9], 1152  }
  0x14   :  { %3042 = vsyncadd [#allocation9], 4294966144  ;;  %v2727_v0 = vld [vmem:[#allocation7 + $0x138] sm:$0xff]  ;;  %v2726_v2 = vld [vmem:[#allocation7 + $0x130] sm:$0xff]  ;;  %vm508_vm0 = vcmask 1043456   ;;  %vm459_vm1 = vcmask 261120  }
  0x15   :  { %v2735_v1 = vld [vmem:[#allocation7 + $0x178] sm:$0xff]  ;;  %222 = vmatpush.bf16.msra.mxu0 %v2727_v0  ;;  %v2734_v3 = vld [vmem:[#allocation7 + $0x170] sm:$0xff]  ;;  %v2725_v4 = vld [vmem:[#allocation7 + $0x128] sm:$0xff]  ;;  %s3053_s2 = smov 96   ;;  %s3054_s3 = smov 32   ;;  %vm479_vm2 = vcmask 64512  }
  0x16   :  { %235 = vmatpush.bf16.msra.mxu1 %v2735_v1  ;;  %v2733_v5 = vld [vmem:[#allocation7 + $0x168] sm:$0xff]  ;;  %v2278_v6 = vld [vmem:[#allocation5 + $0x150] sm:$0xf]  ;;  %v2757_v8 = vld [vmem:[#allocation5 + $0x154] sm:$0xf]  ;;  %s3055_s11 = smov [#allocation10]  }
  0x17   :  { %v2758_v7 = vld [vmem:[#allocation5 + $0x164] sm:$0xf0]  ;;  %v2280_v9 = vld [vmem:[#allocation5 + $0x168] sm:$0xf0]  ;;  %v2266_v12 = vld [vmem:[#allocation5 + $0x120] sm:$0xf] }
  0x18   :  { %v2279_v10 = vor.u32 %v2758_v7, %v2278_v6  ;;  %v2283_v11 = vor.u32 %v2757_v8, %v2280_v9  ;;  %v2755_v13 = vld [vmem:[#allocation5 + $0x134] sm:$0xf0]  ;;  %v2754_v14 = vld [vmem:[#allocation5 + $0x124] sm:$0xf]  ;;  %v2268_v15 = vld [vmem:[#allocation5 + $0x138] sm:$0xf0] }
  0x19   :  { %223 = vmatpush.bf16.msra.mxu0 %v2726_v2  ;;  %v2724_v16 = vld [vmem:[#allocation7 + $0x120] sm:$0xff]  ;;  %v2267_v18 = vor.u32 %v2755_v13, %v2266_v12  ;;  %v2271_v19 = vor.u32 %v2754_v14, %v2268_v15  ;;  %v2254_v20 = vld [vmem:[#allocation5 + $0xf0] sm:$0xf]  ;;  %v2752_v21 = vld [vmem:[#allocation5 + $0x104] sm:$0xf0]  ;;  %s2114_s12 = sshll.u32 %s3055_s11, 4  ;;  %s2115_s12 = int_to_ptr.vmem [resolvable:$true] %s2114_s12 }
  0x1a   :  { %236 = vmatpush.bf16.msra.mxu1 %v2734_v3  ;;  %v2732_v17 = vld [vmem:[#allocation7 + $0x160] sm:$0xff]  ;;  %415 = vmatpush.bf16.msra.mxu2 %v2279_v10  ;;  %v2751_v22 = vld [vmem:[#allocation5 + $0xf4] sm:$0xf]  ;;  %v2256_v23 = vld [vmem:[#allocation5 + $0x108] sm:$0xf0]  ;;  %v2255_v26 = vor.u32 %v2752_v21, %v2254_v20  ;;  %s2116_s15 = sshll.u32 %s3266_s4, 4  ;;  %s2117_s15 = int_to_ptr.hbm [resolvable:$true] %s2116_s15 }
  0x1b   :  { %428 = vmatpush.bf16.msra.mxu3 %v2283_v11  ;;  %v2723_v24 = vld [vmem:[#allocation7 + $0x118] sm:$0xff]  ;;  %v2259_v27 = vor.u32 %v2751_v22, %v2256_v23  ;;  %v2242_v28 = vld [vmem:[#allocation5 + $0xc0] sm:$0xf]  ;;  %v2748_v30 = vld [vmem:[#allocation5 + $0xc4] sm:$0xf] }
  0x1c   :  { %v2731_v25 = vld [vmem:[#allocation7 + $0x158] sm:$0xff]  ;;  %v2722_v32 = vld [vmem:[#allocation7 + $0x110] sm:$0xff]  ;;  %v2746_v37 = vld [vmem:[#allocation5 + $0xa4] sm:$0xf0] }
  0x1d   :  { %224 = vmatpush.bf16.msra.mxu0 %v2725_v4  ;;  %v2749_v29 = vld [vmem:[#allocation5 + $0xd4] sm:$0xf0]  ;;  %v2244_v31 = vld [vmem:[#allocation5 + $0xd8] sm:$0xf0]  ;;  %v2730_v33 = vld [vmem:[#allocation7 + $0x150] sm:$0xff] }
  0x1e   :  { %237 = vmatpush.bf16.msra.mxu1 %v2733_v5  ;;  %416 = vmatpush.bf16.msra.mxu2 %v2267_v18  ;;  %v2243_v34 = vor.u32 %v2749_v29, %v2242_v28  ;;  %v2247_v35 = vor.u32 %v2748_v30, %v2244_v31  ;;  %v2230_v36 = vld [vmem:[#allocation5 + $0x90] sm:$0xf]  ;;  %v2745_v38 = vld [vmem:[#allocation5 + $0x94] sm:$0xf]  ;;  %v2232_v39 = vld [vmem:[#allocation5 + $0xa8] sm:$0xf0] }
  0x1f   :  { %429 = vmatpush.bf16.msra.mxu3 %v2271_v19  ;;  %v2721_v40 = vld [vmem:[#allocation7 + $0x108] sm:$0xff]  ;;  %v84_v42 = vld [vmem:[#allocation2] sm:$0xff]  ;;  %v2231_v43 = vor.u32 %v2746_v37, %v2230_v36  ;;  %v2235_v44 = vor.u32 %v2745_v38, %v2232_v39  ;;  %v2218_v45 = vld [vmem:[#allocation5 + $0x60] sm:$0xf] }
  0x20   :  { %v2729_v41 = vld [vmem:[#allocation7 + $0x148] sm:$0xff]  ;;  %v2743_v46 = vld [vmem:[#allocation5 + $0x74] sm:$0xf0]  ;;  %v2742_v47 = vld [vmem:[#allocation5 + $0x64] sm:$0xf]  ;;  %v120_v51 = vunpack.c.l.b16 %v84_v42  ;;  %v121_v52 = vunpack.c.h.b16 %v84_v42 }
  0x21   :  { %225 = vmatpush.bf16.msra.mxu0 %v2724_v16  ;;  %v2220_v48 = vld [vmem:[#allocation5 + $0x78] sm:$0xf0]  ;;  %v2286_v49 = vld [vmem:[#allocation5 + $0x158] sm:$0xf]  ;;  %v2759_v50 = vld [vmem:[#allocation5 + $0x16c] sm:$0xf0]  ;;  %v2219_v53 = vor.u32 %v2743_v46, %v2218_v45 }
  0x22   :  { %238 = vmatpush.bf16.msra.mxu1 %v2732_v17  ;;  %417 = vmatpush.bf16.msra.mxu2 %v2255_v26  ;;  %v2223_v54 = vor.u32 %v2742_v47, %v2220_v48  ;;  %v2720_v55 = vld [vmem:[#allocation7 + $0x100] sm:$0xff]  ;;  %v2287_v57 = vor.u32 %v2759_v50, %v2286_v49  ;;  %v2274_v58 = vld [vmem:[#allocation5 + $0x128] sm:$0xf]  ;;  %v122_v60 = vpack.c.b16 %v120_v51, %v120_v51  ;;  %v2262_v63 = vld [vmem:[#allocation5 + $0xf8] sm:$0xf] }
  0x23   :  { %430 = vmatpush.bf16.msra.mxu3 %v2259_v27  ;;  %v2728_v56 = vld [vmem:[#allocation7 + $0x140] sm:$0xff]  ;;  %v123_v61 = vpack.c.b16 %v121_v52, %v121_v52  ;;  %v2753_v0 = vld [vmem:[#allocation5 + $0x10c] sm:$0xf0]  ;;  %v2250_v2 = vld [vmem:[#allocation5 + $0xc8] sm:$0xf] }
  0x24   :  { %v2756_v59 = vld [vmem:[#allocation5 + $0x13c] sm:$0xf0]  ;;  %v2263_v1 = vor.u32 %v2753_v0, %v2262_v63  ;;  %v2238_v5 = vld [vmem:[#allocation5 + $0x98] sm:$0xf]  ;;  %v2747_v6 = vld [vmem:[#allocation5 + $0xac] sm:$0xf0] }
  0x25   :  { %226 = vmatpush.bf16.msra.mxu0 %v2723_v24  ;;  %v2275_v62 = vor.u32 %v2756_v59, %v2274_v58  ;;  %v2750_v3 = vld [vmem:[#allocation5 + $0xdc] sm:$0xf0]  ;;  %v2239_v7 = vor.u32 %v2747_v6, %v2238_v5  ;;  %v2226_v8 = vld [vmem:[#allocation5 + $0x68] sm:$0xf]  ;;  %v2206_v11 = vld [vmem:[#allocation5 + $0x30] sm:$0xf] }
  0x26   :  { %239 = vmatpush.bf16.msra.mxu1 %v2731_v25  ;;  %418 = vmatpush.bf16.msra.mxu2 %v2243_v34  ;;  %v2251_v4 = vor.u32 %v2750_v3, %v2250_v2  ;;  %v2744_v9 = vld [vmem:[#allocation5 + $0x7c] sm:$0xf0]  ;;  %v2740_v12 = vld [vmem:[#allocation5 + $0x44] sm:$0xf0]  ;;  %v2739_v13 = vld [vmem:[#allocation5 + $0x34] sm:$0xf] }
  0x27   :  { %431 = vmatpush.bf16.msra.mxu3 %v2247_v35  ;;  %v2227_v10 = vor.u32 %v2744_v9, %v2226_v8  ;;  %v2207_v14 = vor.u32 %v2740_v12, %v2206_v11  ;;  %v2208_v15 = vld [vmem:[#allocation5 + $0x48] sm:$0xf0]  ;;  %v2214_v16 = vld [vmem:[#allocation5 + $0x38] sm:$0xf]  ;;  %v2741_v17 = vld [vmem:[#allocation5 + $0x4c] sm:$0xf0] }
  0x28   :  { %v2211_v18 = vor.u32 %v2739_v13, %v2208_v15  ;;  %v2215_v19 = vor.u32 %v2741_v17, %v2214_v16  ;;  %v2194_v20 = vld [vmem:[#allocation5] sm:$0xf]  ;;  %v2737_v21 = vld [vmem:[#allocation5 + $0x14] sm:$0xf0]  ;;  %v2736_v22 = vld [vmem:[#allocation5 + $0x4] sm:$0xf] }
  0x29   :  { %227 = vmatpush.bf16.msra.mxu0 %v2722_v32  ;;  %v2195_v23 = vor.u32 %v2737_v21, %v2194_v20  ;;  %v2196_v24 = vld [vmem:[#allocation5 + $0x18] sm:$0xf0]  ;;  %v2202_v25 = vld [vmem:[#allocation5 + $0x8] sm:$0xf]  ;;  %v2738_v26 = vld [vmem:[#allocation5 + $0x1c] sm:$0xf0] }
  0x2a   :  { %240 = vmatpush.bf16.msra.mxu1 %v2730_v33  ;;  %419 = vmatpush.bf16.msra.mxu2 %v2231_v43  ;;  %v2199_v27 = vor.u32 %v2736_v22, %v2196_v24  ;;  %v2203_v28 = vor.u32 %v2738_v26, %v2202_v25  ;;  %v81_v29 = vld [vmem:[#allocation8 + $0x30] sm:$0xff] }
  0x2b   :  { %432 = vmatpush.bf16.msra.mxu3 %v2235_v44  ;;  %v118_v30 = vperm.slane %v81_v29, 0  ;;  %v3099_v38 = vld [vmem:[#allocation8 + $0x10] sm:$0xff] }
  0x2c   :  { %v286_v39 = vperm.slane %v3099_v38, 0 }
  0x2d   :  { %228 = vmatpush.bf16.msra.mxu0 %v2721_v40  ;;  %v3102_v40 = vld [vmem:[#allocation8] sm:$0xff] }
  0x2e   :  { %241 = vmatpush.bf16.msra.mxu1 %v2729_v41  ;;  %420 = vmatpush.bf16.msra.mxu2 %v2219_v53  ;;  %v3104_v41 = vld [vmem:[#allocation8 + $0x8] sm:$0xff]  ;;  %v284_v44 = vperm.slane %v3102_v40, 0 }
  0x2f   :  { %433 = vmatpush.bf16.msra.mxu3 %v2223_v54  ;;  %v285_v45 = vperm.slane %v3104_v41, 0 }
  0x31   :  { %229 = vmatpush.bf16.msra.mxu0 %v2720_v55 }
  0x32   :  { %242 = vmatpush.bf16.msra.mxu1 %v2728_v56  ;;  %421 = vmatpush.bf16.msra.mxu2 %v2207_v14 }
  0x33   :  { %434 = vmatpush.bf16.msra.mxu3 %v2211_v18 }
  0x34   :  { %230 = vmatmul.bf16.vlgmr.msra.gmra.mxu0 %v122_v60 }
  0x35   :  { %441 = vmatpush.bf16.msrb.mxu0 %v2287_v57  ;;  %243 = vmatmul.bf16.vlgmr.msra.gmra.mxu1 %v123_v61 }
  0x36   :  { %422 = vmatpush.bf16.msra.mxu2 %v2195_v23 }
  0x37   :  { %435 = vmatpush.bf16.msra.mxu3 %v2199_v27 }
  0x39   :  { %442 = vmatpush.bf16.msrb.mxu0 %v2275_v62 }
  0x3d   :  { %443 = vmatpush.bf16.msrb.mxu0 %v2263_v1 }
  0x41   :  { %444 = vmatpush.bf16.msrb.mxu0 %v2251_v4 }
  0x45   :  { %445 = vmatpush.bf16.msrb.mxu0 %v2239_v7 }
  0x49   :  { %446 = vmatpush.bf16.msrb.mxu0 %v2227_v10 }
  0x4d   :  { %447 = vmatpush.bf16.msrb.mxu0 %v2215_v19 }
  0x51   :  { %448 = vmatpush.bf16.msrb.mxu0 %v2203_v28 }
  0xb1   :  { %v231_v31 = vpop.f32.mrf.mxu0 }
  0xb2   :  { %v244_v32 = vpop.f32.mrf.mxu1  ;;  %v232_v33 = vadd.f32 %v231_v31, %v118_v30 }
  0xb4   :  { %v3095_v34 = vadd.f32 %v244_v32, %v232_v33 }
  0xb6   :  { %v251_v35 = vpack.c.bf16 %v3095_v34, %v3095_v34 }
  0xb8   :  { %423 = vmatmul.bf16.vlgmr.msra.gmra.mxu2 %v251_v35  ;;  %436 = vmatmul.bf16.vlgmr.msra.gmra.mxu3 %v251_v35 }
  0xb9   :  { %449 = vmatmul.bf16.vlgmr.msrb.gmra.mxu0 %v251_v35  ;;  %v233_v36 = vpop.f32.mrf.mxu0 }
  0xba   :  { %v246_v37 = vpop.f32.mrf.mxu1 }
 0x136   :  { %v450_v42 = vpop.f32.mrf.mxu0 }
 0x137   :  { %v451_v43 = vadd.f32 %v450_v42, %v286_v39 }
 0x139   :  { %v3108_v46 = vpack.c.bf16 %v451_v43, %v451_v43 }
 0x13b   :  { %v424_v47 = vpop.f32.mrf.mxu2  ;;  %v437_v48 = vpop.f32.mrf.mxu3  ;;  %v510_v49 = vsel %vm508_vm0, %v3108_v46, 0  ;;  %v576_v42 = vunpack.c.l.b16 %v3108_v46 }
 0x13c   :  { %v425_v50 = vadd.f32 %v424_v47, %v284_v44  ;;  %v438_v51 = vadd.f32 %v437_v48, %v285_v45  ;;  %519 = vmatpush.bf16.msrb.mxu3 %v510_v49 }
 0x13d   :  { %v577_v45 = vpack.c.b16 %v576_v42, %v576_v42 }
 0x13e   :  { %v454_v52 = vpack.c.bf16 %v438_v51, %v425_v50  ;;  %v452_v53 = vpop.f32.mrf.mxu0 }
 0x140   :  { %v457_v54 = vunpack.c.h.b16 %v454_v52  ;;  %v525_v59 = vunpack.c.l.b16 %v454_v52 }
 0x142   :  { %v458_v55 = vpack.c.b16 %v457_v54, %v457_v54  ;;  %v526_v60 = vpack.c.b16 %v525_v59, %v525_v59 }
 0x143   :  { %v426_v56 = vpop.f32.mrf.mxu2  ;;  %v439_v57 = vpop.f32.mrf.mxu3 }
 0x144   :  { %601 = vrot.lane.b32.xlu2 %v458_v55, %s3050_s7  ;;  %529 = vrot.lane.b32.xlu1 %v458_v55, %s3053_s2  ;;  %v464_v58 = vsel %vm459_vm1, %v458_v55, 0 }
 0x145   :  { %473 = vmatpush.bf16.xpose.msrb.mxu1 %v464_v58 }
 0x14c   :  { %599 = vrot.lane.b32.xlu2 %v526_v60, %s3050_s7  ;;  %527 = vrot.lane.b32.xlu1 %v526_v60, %s3053_s2 }
 0x14d   :  { %2288 = vmatmul.msk.bf16.vlgmr.msrb.gmra.mxu1 %vm459_vm1, %v454_v52 }
 0x154   :  { %668 = vrot.lane.b32.xlu1 %v526_v60, %s3054_s3 }
 0x19e   :  { %v602_v61 = vpop.permute.xlu2 %601 }
 0x19f   :  { %v607_v62 = vsel %vm459_vm1, %v602_v61, 0 }
 0x1a0   :  { %616 = vmatpush.bf16.xpose.msrb.mxu2 %v607_v62 }
 0x1a6   :  { %v600_v63 = vpop.permute.xlu2 %599 }
 0x1a7   :  { %2292 = vmatmul.msk.bf16.vlgmr.msrb.gmra.mxu2 %vm459_vm1, %v600_v63 }
 0x1b6   :  { %v530_v0 = vpop.permute.xlu1 %529 }
 0x1b7   :  { %v535_v1 = vsel %vm459_vm1, %v530_v0, 0 }
 0x1b8   :  { %544 = vmatpush.bf16.xpose.msra.mxu3 %v535_v1 }
 0x1be   :  { %v528_v23 = vpop.permute.xlu1 %527 }
 0x1c6   :  { %v669_v29 = vpop.permute.xlu1 %668 }
 0x1ca   :  { %v475_v2 = vpop.f32.mrf.mxu1 }
 0x1cb   :  { %v480_v3 = vsel %vm479_vm2, %v475_v2, -inf }
 0x1cc   :  { %481 = vmax.xlane.f32.xlu0 %v480_v3 }
 0x1d2   :  { %v477_v4 = vpop.f32.mrf.mxu1 }
 0x22a   :  { %v618_v5 = vpop.f32.mrf.mxu2 }
 0x22b   :  { %v622_v6 = vsel %vm479_vm2, %v618_v5, -inf }
 0x22c   :  { %623 = vmax.xlane.f32.xlu1 %v622_v6 }
 0x232   :  { %v620_v7 = vpop.f32.mrf.mxu2 }
 0x23f   :  { %v482_v8 = vpop.xlane.xlu0 %481 }
 0x240   :  { %v483_v9 = vsub.f32 %v475_v2, %v482_v8 }
 0x242   :  { %v484_v10 = vmul.f32 1.442695, %v483_v9 }
 0x244   :  { %2875 = vpow2.f32 %v484_v10 }
 0x24a   :  { %v2876_v11 = vpop.eup %2875 }
 0x24b   :  { %v486_v12 = vsel %vm479_vm2, %v2876_v11, 0.0 }
 0x24c   :  { %487 = vadd.xlane.f32.xlu0 %v486_v12 }
 0x260   :  { %670 = vrot.lane.b32.xlu0 %v458_v55, %s3054_s3 }
 0x29f   :  { %v624_v33 = vpop.xlane.xlu1 %623 }
 0x2a0   :  { %v625_v35 = vsub.f32 %v618_v5, %v624_v33 }
 0x2a2   :  { %v626_v39 = vmul.f32 1.442695, %v625_v35 }
 0x2bf   :  { %v488_v13 = vpop.xlane.xlu0 %487 }
 0x2c0   :  { %2877 = vrcp.f32 %v488_v13  ;;  %v500_v17 = vand.u32 2147483648, %v488_v13  ;;  %v498_v19 = vand.u32 2147483647, %v488_v13  ;;  %vm494_vm4 = vweird.f32 %v488_v13 }
 0x2c1   :  { %2879 = vpow2.f32 %v626_v39 }
 0x2c2   :  { %v501_v21 = vor.u32 1.1754944e-38, %v500_v17  ;;  %vm499_vm6 = vcmp.eq.f32.partialorder %v498_v19, 8.507059e+37 }
 0x2c6   :  { %v2878_v14 = vpop.eup %2877 }
 0x2c7   :  { %v490_v15 = vmul.f32 %v2878_v14, %v488_v13  ;;  %vm495_vm3 = vweird.f32 %v2878_v14  ;;  %v2880_v47 = vpop.eup %2879 }
 0x2c8   :  { %vm496_vm5 = vmor %vm494_vm4, %vm495_vm3  ;;  %v628_v49 = vsel %vm479_vm2, %v2880_v47, 0.0 }
 0x2c9   :  { %v491_v16 = vsub.f32 1.0, %v490_v15 }
 0x2cb   :  { %v492_v18 = vmul.f32 %v2878_v14, %v491_v16 }
 0x2cd   :  { %v493_v20 = vadd.f32 %v2878_v14, %v492_v18 }
 0x2cf   :  { %v497_v22 = vsel %vm496_vm5, %v2878_v14, %v493_v20 }
 0x2d0   :  { %v502_v24 = vsel %vm499_vm6, %v501_v21, %v497_v22  ;;  %vm750_vm6 = vcmask 523264  }
 0x2d1   :  { %v503_v25 = vmul.f32 %v2876_v11, %v502_v24 }
 0x2d2   :  { %v671_v26 = vpop.permute.xlu0 %670 }
 0x2d3   :  { %v676_v27 = vsel %vm459_vm1, %v671_v26, 0  ;;  %v504_v28 = vpack.c.bf16 %v503_v25, %v503_v25 }
 0x2d4   :  { %685 = vmatpush.bf16.xpose.msra.mxu0 %v676_v27 }
 0x2d5   :  { %2289 = vmatmul.msk.bf16.vlgmr.msrb.gmra.mxu3 %vm479_vm2, %v504_v28 }
 0x2db   :  { %2294 = vmatmul.msk.bf16.vlgmr.msra.gmra.mxu0 %vm459_vm1, %v669_v29 }
 0x2e5   :  { %2290 = vmatmul.msk.bf16.vlgmr.msra.gmra.mxu3 %vm459_vm1, %v528_v23 }
 0x358   :  { %v3130_v30 = vpop.f32.mrf.mxu3  ;;  %v687_v31 = vpop.f32.mrf.mxu0 }
 0x359   :  { %v691_v32 = vsel %vm479_vm2, %v687_v31, -inf }
 0x35a   :  { %692 = vmax.xlane.f32.xlu0 %v691_v32 }
 0x360   :  { %v523_v36 = vpop.f32.mrf.mxu3  ;;  %v689_v37 = vpop.f32.mrf.mxu0 }
 0x368   :  { %v546_v43 = vpop.f32.mrf.mxu3 }
 0x369   :  { %v550_v44 = vsel %vm479_vm2, %v546_v43, -inf }
 0x36a   :  { %551 = vmax.xlane.f32.xlu2 %v550_v44 }
 0x36e   :  { %716 = vrot.lane.b32.xlu0 %v577_v45, %s3054_s3 }
 0x370   :  { %v548_v48 = vpop.f32.mrf.mxu3 }
 0x372   :  { %629 = vadd.xlane.f32.xlu2 %v628_v49 }
 0x3cd   :  { %v693_v50 = vpop.xlane.xlu0 %692 }
 0x3ce   :  { %v694_v51 = vsub.f32 %v687_v31, %v693_v50 }
 0x3d0   :  { %v695_v52 = vmul.f32 1.442695, %v694_v51 }
 0x3d2   :  { %2881 = vpow2.f32 %v695_v52  ;;  %v2326_v52 = vld [vmem:[#allocation5 + $0x15c] sm:$0xf] }
 0x3d8   :  { %v3137_v53 = vpop.eup %2881 }
 0x3d9   :  { %v697_v46 = vsel %vm479_vm2, %v3137_v53, 0.0 }
 0x3da   :  { %698 = vadd.xlane.f32.xlu1 %v697_v46  ;;  %v2767_v46 = vld [vmem:[#allocation5 + $0x170] sm:$0xf0] }
 0x3dd   :  { %v552_v54 = vpop.xlane.xlu2 %551 }
 0x3de   :  { %v553_v55 = vsub.f32 %v546_v43, %v552_v54  ;;  %v2322_v54 = vld [vmem:[#allocation5 + $0x12c] sm:$0xf] }
 0x3e0   :  { %v554_v56 = vmul.f32 1.442695, %v553_v55  ;;  %v717_v10 = vpop.permute.xlu0 %716  ;;  %v2327_v55 = vor.u32 %v2767_v46, %v2326_v52  ;;  %v2364_v46 = vld [vmem:[#allocation5 + $0xe8] sm:$0xf0] }
 0x3e1   :  { %v722_v17 = vsel %vm508_vm0, %v717_v10, 0 }
 0x3e2   :  { %2883 = vpow2.f32 %v554_v56  ;;  %820 = vmatpush.bf16.msra.mxu2 %v2327_v55  ;;  %v2354_v55 = vld [vmem:[#allocation5 + $0xa0] sm:$0xf] }
 0x3e5   :  { %v630_v59 = vpop.xlane.xlu2 %629 }
 0x3e6   :  { %2885 = vrcp.f32 %v630_v59  ;;  %v642_v2 = vand.u32 2147483648, %v630_v59  ;;  %vm636_vm8 = vweird.f32 %v630_v59  ;;  %v640_v3 = vand.u32 2147483647, %v630_v59 }
 0x3e8   :  { %v2884_v57 = vpop.eup %2883  ;;  %v643_v6 = vor.u32 1.1754944e-38, %v642_v2  ;;  %vm641_vm10 = vcmp.eq.f32.partialorder %v640_v3, 8.507059e+37  ;;  %v2306_v2 = vld [vmem:[#allocation5 + $0x6c] sm:$0xf]  ;;  %v2762_v3 = vld [vmem:[#allocation5 + $0x80] sm:$0xf0] }
 0x3e9   :  { %v556_v58 = vsel %vm479_vm2, %v2884_v57, 0.0 }
 0x3ea   :  { %557 = vadd.xlane.f32.xlu2 %v556_v58  ;;  %v2765_v58 = vld [vmem:[#allocation5 + $0x110] sm:$0xf0] }
 0x3ec   :  { %v2886_v60 = vpop.eup %2885 }
 0x3ed   :  { %v632_v61 = vmul.f32 %v2886_v60, %v630_v59  ;;  %vm637_vm7 = vweird.f32 %v2886_v60 }
 0x3ee   :  { %vm638_vm9 = vmor %vm636_vm8, %vm637_vm7  ;;  %vm752_vm7 = vcmask 785408  }
 0x3ef   :  { %v633_v62 = vsub.f32 1.0, %v632_v61  ;;  %v2764_v61 = vld [vmem:[#allocation5 + $0xe0] sm:$0xf0] }
 0x3f1   :  { %v634_v63 = vmul.f32 %v2886_v60, %v633_v62  ;;  %v2310_v62 = vld [vmem:[#allocation5 + $0x9c] sm:$0xf] }
 0x3f3   :  { %647 = vrot.lane.b32.xlu1 %v577_v45, %s3050_s7  ;;  %v635_v0 = vadd.f32 %v2886_v60, %v634_v63 }
 0x3f5   :  { %v639_v5 = vsel %vm638_vm9, %v2886_v60, %v635_v0  ;;  %v2314_v60 = vld [vmem:[#allocation5 + $0xcc] sm:$0xf]  ;;  %v2763_v0 = vld [vmem:[#allocation5 + $0xb0] sm:$0xf0] }
 0x3f6   :  { %v644_v7 = vsel %vm641_vm10, %v643_v6, %v639_v5  ;;  %v2315_v63 = vor.u32 %v2764_v61, %v2314_v60  ;;  %v2302_v5 = vld [vmem:[#allocation5 + $0x3c] sm:$0xf]  ;;  %v2761_v6 = vld [vmem:[#allocation5 + $0x50] sm:$0xf0]  ;;  %v2346_v60 = vld [vmem:[#allocation5 + $0x70] sm:$0xf] }
 0x3f7   :  { %v645_v11 = vmul.f32 %v2880_v47, %v644_v7  ;;  %v2303_v7 = vor.u32 %v2761_v6, %v2302_v5  ;;  %v2773_v61 = vld [vmem:[#allocation5 + $0x84] sm:$0xf0]  ;;  %v2340_v6 = vld [vmem:[#allocation5 + $0x58] sm:$0xf0] }
 0x3f9   :  { %v646_v21 = vpack.c.bf16 %v645_v11, %v645_v11 }
 0x402   :  { %578 = vrot.lane.b32.xlu2 %v577_v45, %s3053_s2 }
 0x44d   :  { %v699_v1 = vpop.xlane.xlu1 %698 }
 0x44e   :  { %2887 = vrcp.f32 %v699_v1  ;;  %v711_v35 = vand.u32 2147483648, %v699_v1  ;;  %vm705_vm3 = vweird.f32 %v699_v1  ;;  %v709_v36 = vand.u32 2147483647, %v699_v1 }
 0x450   :  { %v712_v39 = vor.u32 1.1754944e-38, %v711_v35  ;;  %vm710_vm5 = vcmp.eq.f32.partialorder %v709_v36, 8.507059e+37  ;;  %v2780_v35 = vld [vmem:[#allocation5 + $0x134] sm:$0xf] }
 0x454   :  { %v2888_v8 = vpop.eup %2887 }
 0x455   :  { %v701_v18 = vmul.f32 %v2888_v8, %v699_v1  ;;  %vm706_vm15 = vweird.f32 %v2888_v8  ;;  %v2311_v1 = vor.u32 %v2763_v0, %v2310_v62  ;;  %v2772_v62 = vld [vmem:[#allocation5 + $0x74] sm:$0xf]  ;;  %v2348_v0 = vld [vmem:[#allocation5 + $0x88] sm:$0xf0] }
 0x456   :  { %vm707_vm4 = vmor %vm705_vm3, %vm706_vm15 }
 0x457   :  { %v702_v24 = vsub.f32 1.0, %v701_v18  ;;  %v771_v18 = vperm.slane %v3102_v40, 1 }
 0x459   :  { %v703_v29 = vmul.f32 %v2888_v8, %v702_v24  ;;  %v2783_v24 = vld [vmem:[#allocation5 + $0x174] sm:$0xf0] }
 0x45b   :  { %v704_v33 = vadd.f32 %v2888_v8, %v703_v29 }
 0x45d   :  { %v558_v4 = vpop.xlane.xlu2 %557  ;;  %v708_v37 = vsel %vm707_vm4, %v2888_v8, %v704_v33  ;;  %v2298_v8 = vld [vmem:[#allocation5 + $0xc] sm:$0xf]  ;;  %v2378_v33 = vld [vmem:[#allocation5 + $0x130] sm:$0xf] }
 0x45e   :  { %2889 = vrcp.f32 %v558_v4  ;;  %v570_v20 = vand.u32 2147483648, %v558_v4  ;;  %v568_v23 = vand.u32 2147483647, %v558_v4  ;;  %vm564_vm12 = vweird.f32 %v558_v4 }
 0x45f   :  { %v713_v42 = vsel %vm710_vm5, %v712_v39, %v708_v37  ;;  %v2380_v37 = vld [vmem:[#allocation5 + $0x148] sm:$0xf0] }
 0x460   :  { %v571_v26 = vor.u32 1.1754944e-38, %v570_v20  ;;  %vm569_vm14 = vcmp.eq.f32.partialorder %v568_v23, 8.507059e+37  ;;  %v714_v43 = vmul.f32 %v3137_v53, %v713_v42  ;;  %v2766_v53 = vld [vmem:[#allocation5 + $0x140] sm:$0xf0]  ;;  %v2386_v23 = vld [vmem:[#allocation5 + $0x160] sm:$0xf]  ;;  %v2383_v39 = vor.u32 %v2780_v35, %v2380_v37 }
 0x461   :  { %v2323_v56 = vor.u32 %v2766_v53, %v2322_v54  ;;  %v2370_v42 = vld [vmem:[#allocation5 + $0x100] sm:$0xf]  ;;  %v2775_v53 = vld [vmem:[#allocation5 + $0xb4] sm:$0xf0]  ;;  %v854_v35 = vperm.slane %v3104_v41, 2  ;;  %v856_v37 = vperm.slane %v3099_v38, 2 }
 0x462   :  { %v715_v44 = vpack.c.bf16 %v714_v43, %v714_v43  ;;  %v2779_v43 = vld [vmem:[#allocation5 + $0x114] sm:$0xf0] }
 0x463   :  { %821 = vmatpush.bf16.msra.mxu2 %v2323_v56  ;;  %v2774_v56 = vld [vmem:[#allocation5 + $0xa4] sm:$0xf] }
 0x464   :  { %v2890_v9 = vpop.eup %2889 }
 0x465   :  { %v560_v12 = vmul.f32 %v2890_v9, %v558_v4  ;;  %v579_v13 = vpop.permute.xlu2 %578  ;;  %v648_v14 = vpop.permute.xlu1 %647  ;;  %vm565_vm11 = vweird.f32 %v2890_v9  ;;  %v2307_v4 = vor.u32 %v2762_v3, %v2306_v2  ;;  %v2338_v2 = vld [vmem:[#allocation5 + $0x40] sm:$0xf]  ;;  %v2771_v3 = vld [vmem:[#allocation5 + $0x54] sm:$0xf0] }
 0x466   :  { %v584_v15 = vsel %vm508_vm0, %v579_v13, 0  ;;  %v653_v16 = vsel %vm508_vm0, %v648_v14, 0  ;;  %vm566_vm13 = vmor %vm564_vm12, %vm565_vm11  ;;  %v2339_v5 = vor.u32 %v2771_v3, %v2338_v2 }
 0x467   :  { %v561_v19 = vsub.f32 1.0, %v560_v12  ;;  %593 = vmatpush.bf16.msra.mxu1 %v584_v15  ;;  %662 = vmatpush.bf16.msrb.mxu3 %v653_v16 }
 0x469   :  { %v562_v22 = vmul.f32 %v2890_v9, %v561_v19 }
 0x46a   :  { %2293 = vmatmul.msk.bf16.vlgmr.msrb.gmra.mxu3 %vm479_vm2, %v646_v21 }
 0x46b   :  { %731 = vmatpush.bf16.msrb.mxu1 %v722_v17  ;;  %v563_v25 = vadd.f32 %v2890_v9, %v562_v22 }
 0x46d   :  { %v567_v27 = vsel %vm566_vm13, %v2890_v9, %v563_v25  ;;  %v2760_v9 = vld [vmem:[#allocation5 + $0x20] sm:$0xf0] }
 0x46e   :  { %v572_v28 = vsel %vm569_vm14, %v571_v26, %v567_v27  ;;  %v2299_v10 = vor.u32 %v2760_v9, %v2298_v8  ;;  %v2782_v25 = vld [vmem:[#allocation5 + $0x164] sm:$0xf]  ;;  %v2387_v26 = vor.u32 %v2783_v24, %v2386_v23  ;;  %v2769_v8 = vld [vmem:[#allocation5 + $0x24] sm:$0xf0] }
 0x46f   :  { %v573_v31 = vmul.f32 %v2884_v57, %v572_v28  ;;  %v2318_v57 = vld [vmem:[#allocation5 + $0xfc] sm:$0xf]  ;;  %v2796_v23 = vld [vmem:[#allocation7 + $0x60] sm:$0xff] }
 0x470   :  { %v2319_v59 = vor.u32 %v2765_v58, %v2318_v57  ;;  %957 = vmatpush.bf16.msra.mxu3 %v2387_v26  ;;  %v2355_v57 = vor.u32 %v2775_v53, %v2354_v55  ;;  %v2356_v58 = vld [vmem:[#allocation5 + $0xb8] sm:$0xf0]  ;;  %v2788_v24 = vld [vmem:[#allocation7 + $0x20] sm:$0xff] }
 0x471   :  { %v574_v32 = vpack.c.bf16 %v573_v31, %v573_v31 }
 0x472   :  { %822 = vmatpush.bf16.msra.mxu2 %v2319_v59  ;;  %v2359_v59 = vor.u32 %v2774_v56, %v2356_v58 }
 0x473   :  { %2291 = vmatmul.msk.bf16.vlgmr.msra.gmra.mxu1 %vm479_vm2, %v574_v32 }
 0x476   :  { %823 = vmatpush.bf16.msra.mxu2 %v2315_v63  ;;  %v2347_v63 = vor.u32 %v2773_v61, %v2346_v60  ;;  %v1019_v61 = vperm.slane %v3102_v40, 2 }
 0x47a   :  { %824 = vmatpush.bf16.msra.mxu2 %v2311_v1  ;;  %v2351_v1 = vor.u32 %v2772_v62, %v2348_v0 }
 0x47e   :  { %825 = vmatpush.bf16.msra.mxu2 %v2307_v4  ;;  %v2770_v4 = vld [vmem:[#allocation5 + $0x44] sm:$0xf] }
 0x47f   :  { %v2343_v9 = vor.u32 %v2770_v4, %v2340_v6  ;;  %v2542_v4 = vld [vmem:[#allocation5 + $0x2d0] sm:$0xf]  ;;  %v2821_v6 = vld [vmem:[#allocation5 + $0x2d4] sm:$0xf] }
 0x482   :  { %826 = vmatpush.bf16.msra.mxu2 %v2303_v7  ;;  %v2330_v7 = vld [vmem:[#allocation5 + $0x10] sm:$0xf] }
 0x483   :  { %2295 = vmatmul.msk.bf16.vlgmr.msrb.gmra.mxu1 %vm479_vm2, %v715_v44  ;;  %v2778_v44 = vld [vmem:[#allocation5 + $0x104] sm:$0xf] }
 0x486   :  { %827 = vmatpush.bf16.msra.mxu2 %v2299_v10  ;;  %v2768_v10 = vld [vmem:[#allocation5 + $0x14] sm:$0xf] }
 0x4ed   :  { %v664_v45 = vpop.f32.mrf.mxu3 }
 0x4ee   :  { %742 = vrot.lane.b32.xlu0 %v664_v45, %s3050_s7  ;;  %v2371_v45 = vor.u32 %v2779_v43, %v2370_v42 }
 0x4f0   :  { %v595_v47 = vpop.f32.mrf.mxu1 }
 0x4f1   :  { %738 = vrot.lane.b32.xlu2 %v595_v47, %s3054_s3  ;;  %v2372_v47 = vld [vmem:[#allocation5 + $0x118] sm:$0xf0] }
 0x4f5   :  { %v666_v48 = vpop.f32.mrf.mxu3 }
 0x4f6   :  { %v2375_v48 = vor.u32 %v2778_v44, %v2372_v47  ;;  %v2786_v47 = vld [vmem:[#allocation7 + $0x10] sm:$0xff] }
 0x4f8   :  { %v597_v49 = vpop.f32.mrf.mxu1 }
 0x4f9   :  { %v2362_v49 = vld [vmem:[#allocation5 + $0xd0] sm:$0xf] }
 0x500   :  { %v733_v50 = vpop.f32.mrf.mxu1 }
 0x501   :  { %746 = vrot.lane.b32.xlu1 %v733_v50, %s3053_s2  ;;  %v2777_v50 = vld [vmem:[#allocation5 + $0xe4] sm:$0xf0] }
 0x502   :  { %v2363_v52 = vor.u32 %v2777_v50, %v2362_v49  ;;  %v2785_v49 = vld [vmem:[#allocation7 + $0x8] sm:$0xff]  ;;  %v2784_v50 = vld [vmem:[#allocation7] sm:$0xff] }
 0x508   :  { %v735_v51 = vpop.f32.mrf.mxu1 }
 0x509   :  { %v2776_v51 = vld [vmem:[#allocation5 + $0xd4] sm:$0xf] }
 0x50a   :  { %v2367_v54 = vor.u32 %v2776_v51, %v2364_v46  ;;  %v876_v51 = vperm.slane %v3099_v38, 1 }
 0x54b   :  { %v739_v11 = vpop.permute.xlu2 %738 }
 0x54c   :  { %v749_v13 = vsel %vm459_vm1, %v3130_v30, %v739_v11  ;;  %v2388_v30 = vld [vmem:[#allocation5 + $0x178] sm:$0xf0]  ;;  %v2332_v11 = vld [vmem:[#allocation5 + $0x28] sm:$0xf0] }
 0x54d   :  { %v2391_v27 = vor.u32 %v2782_v25, %v2388_v30  ;;  %v2795_v30 = vld [vmem:[#allocation7 + $0x58] sm:$0xff] }
 0x54f   :  { %970 = vmatpush.bf16.msrb.mxu0 %v2391_v27  ;;  %v2787_v27 = vld [vmem:[#allocation7 + $0x18] sm:$0xff] }
 0x553   :  { %971 = vmatpush.bf16.msrb.mxu0 %v2383_v39 }
 0x557   :  { %972 = vmatpush.bf16.msrb.mxu0 %v2375_v48  ;;  %v2792_v48 = vld [vmem:[#allocation7 + $0x40] sm:$0xff] }
 0x55b   :  { %973 = vmatpush.bf16.msrb.mxu0 %v2367_v54  ;;  %v875_v54 = vperm.slane %v3104_v41, 1 }
 0x55f   :  { %974 = vmatpush.bf16.msrb.mxu0 %v2359_v59 }
 0x560   :  { %v743_v12 = vpop.permute.xlu0 %742 }
 0x561   :  { %v751_v14 = vsel %vm750_vm6, %v749_v13, %v743_v12  ;;  %v2331_v12 = vor.u32 %v2769_v8, %v2330_v7  ;;  %v2335_v13 = vor.u32 %v2768_v10, %v2332_v11  ;;  %v2544_v8 = vld [vmem:[#allocation5 + $0x2e8] sm:$0xf0]  ;;  %v2823_v10 = vld [vmem:[#allocation5 + $0x2ec] sm:$0xf0] }
 0x562   :  { %v2547_v11 = vor.u32 %v2821_v6, %v2544_v8  ;;  %v2805_v6 = vld [vmem:[#allocation5 + $0x1cc] sm:$0xf0] }
 0x563   :  { %975 = vmatpush.bf16.msrb.mxu0 %v2351_v1 }
 0x567   :  { %976 = vmatpush.bf16.msrb.mxu0 %v2343_v9  ;;  %v2550_v9 = vld [vmem:[#allocation5 + $0x2d8] sm:$0xf] }
 0x56b   :  { %977 = vmatpush.bf16.msrb.mxu0 %v2335_v13 }
 0x56f   :  { %1349 = vmatpush.bf16.msra.mxu0 %v2547_v11  ;;  %v2800_v11 = vld [vmem:[#allocation5 + $0x184] sm:$0xf] }
 0x573   :  { %v747_v15 = vpop.permute.xlu1 %746 }
 0x574   :  { %v753_v16 = vsel %vm752_vm7, %v751_v14, %v747_v15  ;;  %v2799_v14 = vld [vmem:[#allocation7 + $0x78] sm:$0xff] }
 0x575   :  { %v754_v17 = vpack.c.bf16 %v753_v16, %v753_v16  ;;  %v2791_v15 = vld [vmem:[#allocation7 + $0x38] sm:$0xff]  ;;  %1129 = vmatpush.bf16.msrb.mxu2 %v2799_v14 }
 0x576   :  { %1116 = vmatpush.bf16.msra.mxu1 %v2791_v15 }
 0x577   :  { %828 = vmatmul.bf16.vlgmr.msra.gmra.mxu2 %v754_v17 }
 0x5fa   :  { %v829_v19 = vpop.f32.mrf.mxu2 }
 0x5fb   :  { %v830_v20 = vadd.f32 %v829_v19, %v771_v18  ;;  %v2798_v18 = vld [vmem:[#allocation7 + $0x70] sm:$0xff] }
 0x5fc   :  { %v2790_v19 = vld [vmem:[#allocation7 + $0x30] sm:$0xff]  ;;  %1130 = vmatpush.bf16.msrb.mxu2 %v2798_v18  ;;  %v2819_v18 = vld [vmem:[#allocation5 + $0x2b4] sm:$0xf0] }
 0x5fd   :  { %v833_v21 = vadd.f32 %v830_v20, %v3095_v34  ;;  %v2781_v34 = vld [vmem:[#allocation5 + $0x144] sm:$0xf0]  ;;  %1117 = vmatpush.bf16.msra.mxu1 %v2790_v19  ;;  %v2818_v19 = vld [vmem:[#allocation5 + $0x2a4] sm:$0xf] }
 0x5fe   :  { %v2379_v36 = vor.u32 %v2781_v34, %v2378_v33 }
 0x5ff   :  { %834 = vadd.xlane.f32.xlu2 %v833_v21 }
 0x600   :  { %958 = vmatpush.bf16.msra.mxu3 %v2379_v36 }
 0x602   :  { %v831_v22 = vpop.f32.mrf.mxu2 }
 0x603   :  { %v2789_v22 = vld [vmem:[#allocation7 + $0x28] sm:$0xff] }
 0x604   :  { %959 = vmatpush.bf16.msra.mxu3 %v2371_v45  ;;  %1118 = vmatpush.bf16.msra.mxu1 %v2789_v22  ;;  %v2793_v45 = vld [vmem:[#allocation7 + $0x48] sm:$0xff] }
 0x605   :  { %v2538_v22 = vld [vmem:[#allocation5 + $0x2a8] sm:$0xf] }
 0x608   :  { %960 = vmatpush.bf16.msra.mxu3 %v2363_v52  ;;  %1119 = vmatpush.bf16.msra.mxu1 %v2788_v24 }
 0x60c   :  { %961 = vmatpush.bf16.msra.mxu3 %v2355_v57  ;;  %1120 = vmatpush.bf16.msra.mxu1 %v2787_v27  ;;  %v2815_v27 = vld [vmem:[#allocation5 + $0x274] sm:$0xf] }
 0x610   :  { %962 = vmatpush.bf16.msra.mxu3 %v2347_v63  ;;  %1121 = vmatpush.bf16.msra.mxu1 %v2786_v47 }
 0x614   :  { %963 = vmatpush.bf16.msra.mxu3 %v2339_v5  ;;  %1122 = vmatpush.bf16.msra.mxu1 %v2785_v49  ;;  %v2822_v5 = vld [vmem:[#allocation5 + $0x2e4] sm:$0xf0]  ;;  %v2494_v49 = vld [vmem:[#allocation5 + $0x210] sm:$0xf] }
 0x615   :  { %v2543_v7 = vor.u32 %v2822_v5, %v2542_v4  ;;  %v2472_v4 = vld [vmem:[#allocation5 + $0x1c8] sm:$0xf0]  ;;  %v2478_v5 = vld [vmem:[#allocation5 + $0x1b8] sm:$0xf] }
 0x616   :  { %v2479_v8 = vor.u32 %v2805_v6, %v2478_v5 }
 0x618   :  { %964 = vmatpush.bf16.msra.mxu3 %v2331_v12  ;;  %1123 = vmatpush.bf16.msra.mxu1 %v2784_v50  ;;  %v2551_v12 = vor.u32 %v2823_v10, %v2550_v9  ;;  %v2810_v50 = vld [vmem:[#allocation5 + $0x224] sm:$0xf0]  ;;  %v2458_v9 = vld [vmem:[#allocation5 + $0x180] sm:$0xf]  ;;  %v2801_v10 = vld [vmem:[#allocation5 + $0x194] sm:$0xf0] }
 0x61c   :  { %1336 = vmatpush.bf16.msrb.mxu3 %v2543_v7  ;;  %1362 = vmatpush.bf16.msrb.mxu1 %v2551_v12  ;;  %v2459_v12 = vor.u32 %v2801_v10, %v2458_v9 }
 0x672   :  { %v835_v28 = vpop.xlane.xlu2 %834 }
 0x673   :  { %v836_v29 = vmul.f32 0.0078125, %v835_v28 }
 0x675   :  { %v3160_v31 = vsub.f32 %v833_v21, %v836_v29  ;;  %v2797_v21 = vld [vmem:[#allocation7 + $0x68] sm:$0xff] }
 0x676   :  { %1131 = vmatpush.bf16.msrb.mxu2 %v2797_v21  ;;  %v2532_v21 = vld [vmem:[#allocation5 + $0x2b8] sm:$0xf0] }
 0x677   :  { %v838_v32 = vmul.f32 %v3160_v31, %v3160_v31  ;;  %v2535_v24 = vor.u32 %v2818_v19, %v2532_v21 }
 0x679   :  { %839 = vadd.xlane.f32.xlu0 %v838_v32  ;;  %v2794_v32 = vld [vmem:[#allocation7 + $0x50] sm:$0xff]  ;;  %1350 = vmatpush.bf16.msra.mxu0 %v2535_v24 }
 0x67a   :  { %1132 = vmatpush.bf16.msrb.mxu2 %v2796_v23  ;;  %v2820_v23 = vld [vmem:[#allocation5 + $0x2bc] sm:$0xf0] }
 0x67e   :  { %1133 = vmatpush.bf16.msrb.mxu2 %v2795_v30  ;;  %v2816_v30 = vld [vmem:[#allocation5 + $0x284] sm:$0xf0] }
 0x682   :  { %1134 = vmatpush.bf16.msrb.mxu2 %v2794_v32  ;;  %v2526_v32 = vld [vmem:[#allocation5 + $0x278] sm:$0xf] }
 0x686   :  { %1135 = vmatpush.bf16.msrb.mxu2 %v2793_v45  ;;  %v2814_v45 = vld [vmem:[#allocation5 + $0x25c] sm:$0xf0] }
 0x68a   :  { %1136 = vmatpush.bf16.msrb.mxu2 %v2792_v48 }
 0x6ec   :  { %v840_v16 = vpop.xlane.xlu0 %839 }
 0x6ed   :  { %v841_v17 = vmul.f32 0.0078125, %v840_v16 }
 0x6ef   :  { %v842_v20 = vadd.f32 1e-05, %v841_v17  ;;  %v2530_v17 = vld [vmem:[#allocation5 + $0x2a0] sm:$0xf] }
 0x6f1   :  { %2891 = vrsqrt.f32 %v842_v20  ;;  %vm849_vm9 = vweird.f32 %v842_v20 }
 0x6f7   :  { %v2892_v25 = vpop.eup %2891 }
 0x6f8   :  { %v844_v26 = vmul.f32 %v2892_v25, %v842_v20  ;;  %vm850_vm8 = vweird.f32 %v2892_v25  ;;  %v2531_v20 = vor.u32 %v2819_v18, %v2530_v17 }
 0x6f9   :  { %vm851_vm10 = vmor %vm849_vm9, %vm850_vm8 }
 0x6fa   :  { %v845_v28 = vmul.f32 %v2892_v25, %v844_v26  ;;  %1337 = vmatpush.bf16.msrb.mxu3 %v2531_v20  ;;  %v2518_v26 = vld [vmem:[#allocation5 + $0x270] sm:$0xf] }
 0x6fc   :  { %v846_v29 = vmul.f32 0.5, %v845_v28  ;;  %v2519_v28 = vor.u32 %v2816_v30, %v2518_v26 }
 0x6fe   :  { %v847_v33 = vsub.f32 1.5, %v846_v29  ;;  %v2520_v29 = vld [vmem:[#allocation5 + $0x288] sm:$0xf0]  ;;  %1338 = vmatpush.bf16.msrb.mxu3 %v2519_v28 }
 0x700   :  { %v848_v34 = vmul.f32 %v2892_v25, %v847_v33  ;;  %v2817_v33 = vld [vmem:[#allocation5 + $0x28c] sm:$0xf0] }
 0x702   :  { %v852_v36 = vsel %vm851_vm10, %v2892_v25, %v848_v34  ;;  %v2539_v25 = vor.u32 %v2820_v23, %v2538_v22  ;;  %v2523_v34 = vor.u32 %v2815_v27, %v2520_v29  ;;  %v1163_v27 = vperm.slane %v3102_v40, 3  ;;  %v3184_v40 = vld [vmem:[#allocation8 + $0x20] sm:$0xff] }
 0x703   :  { %v853_v39 = vmul.f32 %v852_v36, %v3160_v31  ;;  %v2506_v36 = vld [vmem:[#allocation5 + $0x240] sm:$0xf]  ;;  %v1165_v29 = vperm.slane %v3104_v41, 3 }
 0x704   :  { %1363 = vmatpush.bf16.msrb.mxu1 %v2539_v25  ;;  %1351 = vmatpush.bf16.msra.mxu0 %v2523_v34 }
 0x705   :  { %v855_v42 = vmul.f32 %v854_v35, %v853_v39  ;;  %v2527_v35 = vor.u32 %v2817_v33, %v2526_v32  ;;  %v2812_v39 = vld [vmem:[#allocation5 + $0x244] sm:$0xf] }
 0x707   :  { %v857_v43 = vadd.f32 %v856_v37, %v855_v42  ;;  %v2813_v37 = vld [vmem:[#allocation5 + $0x254] sm:$0xf0] }
 0x708   :  { %1364 = vmatpush.bf16.msrb.mxu1 %v2527_v35  ;;  %v2507_v42 = vor.u32 %v2813_v37, %v2506_v36  ;;  %v3181_v36 = vld [vmem:[#allocation8 + $0x28] sm:$0xff] }
 0x709   :  { %v858_v44 = vpack.c.bf16 %v857_v43, %v857_v43  ;;  %v1207_v37 = vperm.slane %v3181_v36, 0 }
 0x70a   :  { %1339 = vmatpush.bf16.msrb.mxu3 %v2507_v42  ;;  %v3186_v42 = vld [vmem:[#allocation8 + $0x18] sm:$0xff] }
 0x70b   :  { %965 = vmatmul.bf16.vlgmr.msra.gmra.mxu3 %v858_v44  ;;  %978 = vmatmul.bf16.vlgmr.msrb.gmra.mxu0 %v858_v44  ;;  %v2514_v44 = vld [vmem:[#allocation5 + $0x248] sm:$0xf] }
 0x70c   :  { %v2515_v48 = vor.u32 %v2814_v45, %v2514_v44  ;;  %v1205_v44 = vperm.slane %v3186_v42, 0 }
 0x70e   :  { %1365 = vmatpush.bf16.msrb.mxu1 %v2515_v48 }
 0x788   :  { %v979_v52 = vpop.f32.mrf.mxu0 }
 0x789   :  { %v980_v46 = vadd.f32 %v979_v52, %v876_v51  ;;  %v2809_v51 = vld [vmem:[#allocation5 + $0x214] sm:$0xf]  ;;  %v2495_v52 = vor.u32 %v2810_v50, %v2494_v49 }
 0x78b   :  { %v984_v31 = vmax.f32 %v980_v46, 0.0  ;;  %v2496_v46 = vld [vmem:[#allocation5 + $0x228] sm:$0xf0]  ;;  %1340 = vmatpush.bf16.msrb.mxu3 %v2495_v52 }
 0x78d   :  { %v986_v55 = vpack.c.bf16 %v984_v31, %v984_v31  ;;  %v2502_v31 = vld [vmem:[#allocation5 + $0x218] sm:$0xf] }
 0x78e   :  { %v966_v53 = vpop.f32.mrf.mxu3 }
 0x78f   :  { %v967_v56 = vadd.f32 %v966_v53, %v875_v54  ;;  %1137 = vmatmul.bf16.vlgmr.msrb.gmra.mxu2 %v986_v55  ;;  %v2811_v54 = vld [vmem:[#allocation5 + $0x22c] sm:$0xf0]  ;;  %v2499_v55 = vor.u32 %v2809_v51, %v2496_v46 }
 0x790   :  { %v981_v57 = vpop.f32.mrf.mxu0  ;;  %v2503_v53 = vor.u32 %v2811_v54, %v2502_v31 }
 0x791   :  { %v983_v58 = vmax.f32 %v967_v56, 0.0  ;;  %v2482_v56 = vld [vmem:[#allocation5 + $0x1e0] sm:$0xf]  ;;  %v2807_v57 = vld [vmem:[#allocation5 + $0x1f4] sm:$0xf0] }
 0x792   :  { %1366 = vmatpush.bf16.msrb.mxu1 %v2503_v53 }
 0x793   :  { %v985_v59 = vpack.c.bf16 %v983_v58, %v983_v58  ;;  %v2806_v58 = vld [vmem:[#allocation5 + $0x1e4] sm:$0xf] }
 0x795   :  { %1124 = vmatmul.bf16.vlgmr.msra.gmra.mxu1 %v985_v59  ;;  %v2483_v59 = vor.u32 %v2807_v57, %v2482_v56 }
 0x796   :  { %v968_v60 = vpop.f32.mrf.mxu3 }
 0x797   :  { %v2484_v60 = vld [vmem:[#allocation5 + $0x1f8] sm:$0xf0]  ;;  %1341 = vmatpush.bf16.msrb.mxu3 %v2483_v59 }
 0x812   :  { %v1125_v62 = vpop.f32.mrf.mxu1  ;;  %v1138_v63 = vpop.f32.mrf.mxu2 }
 0x813   :  { %v1126_v0 = vadd.f32 %v1125_v62, %v1019_v61  ;;  %v2490_v61 = vld [vmem:[#allocation5 + $0x1e8] sm:$0xf]  ;;  %v2808_v62 = vld [vmem:[#allocation5 + $0x1fc] sm:$0xf0] }
 0x815   :  { %v1139_v38 = vadd.f32 %v1138_v63, %v1126_v0  ;;  %v2487_v63 = vor.u32 %v2806_v58, %v2484_v60  ;;  %v2491_v0 = vor.u32 %v2808_v62, %v2490_v61 }
 0x817   :  { %v1142_v1 = vadd.f32 %v1139_v38, %v857_v43  ;;  %v2508_v43 = vld [vmem:[#allocation5 + $0x258] sm:$0xf0]  ;;  %1367 = vmatpush.bf16.msrb.mxu1 %v2491_v0  ;;  %v2470_v38 = vld [vmem:[#allocation5 + $0x1b0] sm:$0xf] }
 0x818   :  { %v2511_v47 = vor.u32 %v2812_v39, %v2508_v43  ;;  %v1206_v43 = vperm.slane %v3184_v40, 0 }
 0x819   :  { %1143 = vadd.xlane.f32.xlu1 %v1142_v1 }
 0x81a   :  { %v1127_v2 = vpop.f32.mrf.mxu1  ;;  %v1140_v3 = vpop.f32.mrf.mxu2  ;;  %1352 = vmatpush.bf16.msra.mxu0 %v2511_v47 }
 0x81b   :  { %v2803_v2 = vld [vmem:[#allocation5 + $0x1b4] sm:$0xf]  ;;  %1368 = vmatpush.bf16.msrb.mxu1 %v2479_v8 }
 0x81c   :  { %v2475_v7 = vor.u32 %v2803_v2, %v2472_v4 }
 0x81e   :  { %1353 = vmatpush.bf16.msra.mxu0 %v2499_v55 }
 0x822   :  { %1354 = vmatpush.bf16.msra.mxu0 %v2487_v63 }
 0x826   :  { %1355 = vmatpush.bf16.msra.mxu0 %v2475_v7 }
 0x88c   :  { %v1144_v13 = vpop.xlane.xlu1 %1143 }
 0x88d   :  { %v1145_v14 = vmul.f32 0.0078125, %v1144_v13  ;;  %v2460_v13 = vld [vmem:[#allocation5 + $0x198] sm:$0xf0] }
 0x88e   :  { %v2463_v17 = vor.u32 %v2800_v11, %v2460_v13 }
 0x88f   :  { %v3170_v15 = vsub.f32 %v1142_v1, %v1145_v14  ;;  %v2804_v1 = vld [vmem:[#allocation5 + $0x1c4] sm:$0xf0] }
 0x890   :  { %v2471_v3 = vor.u32 %v2804_v1, %v2470_v38  ;;  %v2466_v14 = vld [vmem:[#allocation5 + $0x188] sm:$0xf]  ;;  %1356 = vmatpush.bf16.msra.mxu0 %v2463_v17 }
 0x891   :  { %v1147_v16 = vmul.f32 %v3170_v15, %v3170_v15 }
 0x892   :  { %1342 = vmatpush.bf16.msrb.mxu3 %v2471_v3 }
 0x893   :  { %1148 = vadd.xlane.f32.xlu2 %v1147_v16  ;;  %v2802_v16 = vld [vmem:[#allocation5 + $0x19c] sm:$0xf0] }
 0x894   :  { %v2467_v18 = vor.u32 %v2802_v16, %v2466_v14 }
 0x896   :  { %1343 = vmatpush.bf16.msrb.mxu3 %v2459_v12  ;;  %1369 = vmatpush.bf16.msrb.mxu1 %v2467_v18 }
 0x906   :  { %v1149_v19 = vpop.xlane.xlu2 %1148 }
 0x907   :  { %v1150_v20 = vmul.f32 0.0078125, %v1149_v19 }
 0x909   :  { %v1151_v21 = vadd.f32 1e-05, %v1150_v20 }
 0x90b   :  { %2893 = vrsqrt.f32 %v1151_v21  ;;  %vm1158_vm12 = vweird.f32 %v1151_v21 }
 0x911   :  { %v2894_v22 = vpop.eup %2893 }
 0x912   :  { %v1153_v23 = vmul.f32 %v2894_v22, %v1151_v21  ;;  %vm1159_vm11 = vweird.f32 %v2894_v22 }
 0x913   :  { %vm1160_vm13 = vmor %vm1158_vm12, %vm1159_vm11 }
 0x914   :  { %v1154_v24 = vmul.f32 %v2894_v22, %v1153_v23 }
 0x916   :  { %v1155_v25 = vmul.f32 0.5, %v1154_v24 }
 0x918   :  { %v1156_v26 = vsub.f32 1.5, %v1155_v25 }
 0x91a   :  { %v1157_v30 = vmul.f32 %v2894_v22, %v1156_v26 }
 0x91c   :  { %v1161_v28 = vsel %vm1160_vm13, %v2894_v22, %v1157_v30 }
 0x91d   :  { %v1162_v32 = vmul.f32 %v1161_v28, %v3170_v15 }
 0x91f   :  { %v1164_v33 = vmul.f32 %v1163_v27, %v1162_v32 }
 0x921   :  { %v3177_v34 = vadd.f32 %v1165_v29, %v1164_v33 }
 0x923   :  { %v1171_v35 = vpack.c.bf16 %v3177_v34, %v3177_v34 }
 0x925   :  { %1344 = vmatmul.bf16.vlgmr.msrb.gmra.mxu3 %v1171_v35  ;;  %1357 = vmatmul.bf16.vlgmr.msra.gmra.mxu0 %v1171_v35 }
 0x926   :  { %1370 = vmatmul.bf16.vlgmr.msrb.gmra.mxu1 %v1171_v35 }
 0x9a2   :  { %v1358_v39 = vpop.f32.mrf.mxu0 }
 0x9a3   :  { %v1371_v41 = vpop.f32.mrf.mxu1  ;;  %v1359_v49 = vadd.f32 %v1358_v39, %v1206_v43 }
 0x9a4   :  { %v1372_v15 = vadd.f32 %v1371_v41, %v1207_v37 }
 0x9a6   :  { %v3190_v45 = vpack.c.bf16 %v1372_v15, %v1372_v15 }
 0x9a8   :  { %v1428_v47 = vsel %vm508_vm0, %v3190_v45, 0  ;;  %v1345_v48 = vpop.f32.mrf.mxu3  ;;  %v1494_v15 = vunpack.c.l.b16 %v3190_v45 }
 0x9a9   :  { %v1346_v50 = vadd.f32 %v1345_v48, %v1205_v44  ;;  %1437 = vmatpush.bf16.msra.mxu3 %v1428_v47 }
 0x9aa   :  { %v1360_v51 = vpop.f32.mrf.mxu0 }
 0x9ab   :  { %v1375_v52 = vpack.c.bf16 %v1359_v49, %v1346_v50  ;;  %v1373_v46 = vpop.f32.mrf.mxu1  ;;  %v1495_v50 = vpack.c.b16 %v1494_v15, %v1494_v15 }
 0x9ad   :  { %v1378_v31 = vunpack.c.h.b16 %v1375_v52  ;;  %v1443_v54 = vunpack.c.l.b16 %v1375_v52 }
 0x9af   :  { %v1444_v55 = vpack.c.b16 %v1443_v54, %v1443_v54  ;;  %v1379_v53 = vpack.c.b16 %v1378_v31, %v1378_v31 }
 0x9b0   :  { %v1347_v56 = vpop.f32.mrf.mxu3 }
 0x9b1   :  { %1445 = vrot.lane.b32.xlu2 %v1444_v55, %s3053_s2  ;;  %1519 = vrot.lane.b32.xlu1 %v1379_v53, %s3050_s7  ;;  %v1384_v57 = vsel %vm459_vm1, %v1379_v53, 0 }
 0x9b2   :  { %1447 = vrot.lane.b32.xlu0 %v1379_v53, %s3053_s2  ;;  %1393 = vmatpush.bf16.xpose.msra.mxu2 %v1384_v57 }
 0x9b9   :  { %1588 = vrot.lane.b32.xlu1 %v1379_v53, %s3054_s3  ;;  %2552 = vmatmul.msk.bf16.vlgmr.msra.gmra.mxu2 %vm459_vm1, %v1375_v52 }
 0x9ba   :  { %1517 = vrot.lane.b32.xlu0 %v1444_v55, %s3050_s7 }
 0x9c2   :  { %1586 = vrot.lane.b32.xlu0 %v1444_v55, %s3054_s3 }
 0xa0b   :  { %v1446_v63 = vpop.permute.xlu2 %1445 }
 0xa23   :  { %v1520_v58 = vpop.permute.xlu1 %1519 }
 0xa24   :  { %v1525_v59 = vsel %vm459_vm1, %v1520_v58, 0  ;;  %v1448_v60 = vpop.permute.xlu0 %1447 }
 0xa25   :  { %v1453_v61 = vsel %vm459_vm1, %v1448_v60, 0  ;;  %1534 = vmatpush.bf16.xpose.msrb.mxu2 %v1525_v59 }
 0xa26   :  { %1462 = vmatpush.bf16.xpose.msrb.mxu0 %v1453_v61 }
 0xa2b   :  { %v1589_v62 = vpop.permute.xlu1 %1588 }
 0xa2c   :  { %v1594_v0 = vsel %vm459_vm1, %v1589_v62, 0  ;;  %v1518_v38 = vpop.permute.xlu0 %1517 }
 0xa2d   :  { %2554 = vmatmul.msk.bf16.vlgmr.msrb.gmra.mxu0 %vm459_vm1, %v1446_v63  ;;  %2556 = vmatmul.msk.bf16.vlgmr.msrb.gmra.mxu2 %vm459_vm1, %v1518_v38 }
 0xa2e   :  { %1603 = vmatpush.bf16.xpose.msra.mxu0 %v1594_v0 }
 0xa34   :  { %v1587_v1 = vpop.permute.xlu0 %1586 }
 0xa3c   :  { %v1395_v2 = vpop.f32.mrf.mxu2 }
 0xa3d   :  { %2558 = vmatmul.msk.bf16.vlgmr.msra.gmra.mxu0 %vm459_vm1, %v1587_v1  ;;  %v1399_v3 = vsel %vm479_vm2, %v1395_v2, -inf }
 0xa3e   :  { %1400 = vmax.xlane.f32.xlu2 %v1399_v3 }
 0xa44   :  { %v1397_v4 = vpop.f32.mrf.mxu2 }
 0xaaa   :  { %v1464_v5 = vpop.f32.mrf.mxu0 }
 0xaab   :  { %v1468_v6 = vsel %vm479_vm2, %v1464_v5, -inf }
 0xaac   :  { %1469 = vmax.xlane.f32.xlu1 %v1468_v6 }
 0xab0   :  { %v1536_v7 = vpop.f32.mrf.mxu2 }
 0xab1   :  { %v1401_v8 = vpop.xlane.xlu2 %1400  ;;  %v1540_v9 = vsel %vm479_vm2, %v1536_v7, -inf }
 0xab2   :  { %v1466_v10 = vpop.f32.mrf.mxu0  ;;  %v1402_v11 = vsub.f32 %v1395_v2, %v1401_v8  ;;  %1541 = vmax.xlane.f32.xlu0 %v1540_v9 }
 0xab4   :  { %v1403_v12 = vmul.f32 1.442695, %v1402_v11 }
 0xab6   :  { %2895 = vpow2.f32 %v1403_v12 }
 0xab8   :  { %v1538_v13 = vpop.f32.mrf.mxu2 }
 0xaba   :  { %v1605_v14 = vpop.f32.mrf.mxu0 }
 0xabb   :  { %v1609_v16 = vsel %vm479_vm2, %v1605_v14, -inf }
 0xabc   :  { %v2896_v17 = vpop.eup %2895  ;;  %1610 = vmax.xlane.f32.xlu2 %v1609_v16 }
 0xabd   :  { %v1405_v18 = vsel %vm479_vm2, %v2896_v17, 0.0 }
 0xabe   :  { %1406 = vadd.xlane.f32.xlu1 %v1405_v18 }
 0xac2   :  { %v1607_v19 = vpop.f32.mrf.mxu0 }
 0xb1f   :  { %v1470_v20 = vpop.xlane.xlu1 %1469 }
 0xb20   :  { %v1471_v21 = vsub.f32 %v1464_v5, %v1470_v20 }
 0xb22   :  { %v1472_v22 = vmul.f32 1.442695, %v1471_v21 }
 0xb24   :  { %2897 = vpow2.f32 %v1472_v22 }
 0xb25   :  { %v1542_v23 = vpop.xlane.xlu0 %1541 }
 0xb26   :  { %v1543_v24 = vsub.f32 %v1536_v7, %v1542_v23 }
 0xb28   :  { %v1544_v25 = vmul.f32 1.442695, %v1543_v24 }
 0xb2a   :  { %v3213_v26 = vpop.eup %2897  ;;  %2899 = vpow2.f32 %v1544_v25 }
 0xb2b   :  { %v1474_v30 = vsel %vm479_vm2, %v3213_v26, 0.0 }
 0xb2c   :  { %1475 = vadd.xlane.f32.xlu0 %v1474_v30 }
 0xb2f   :  { %v1611_v27 = vpop.xlane.xlu2 %1610 }
 0xb30   :  { %v3217_v28 = vpop.eup %2899  ;;  %v1612_v29 = vsub.f32 %v1605_v14, %v1611_v27 }
 0xb31   :  { %v1407_v32 = vpop.xlane.xlu1 %1406  ;;  %v1546_v33 = vsel %vm479_vm2, %v3217_v28, 0.0 }
 0xb32   :  { %v1613_v35 = vmul.f32 1.442695, %v1612_v29  ;;  %2901 = vrcp.f32 %v1407_v32  ;;  %1547 = vadd.xlane.f32.xlu2 %v1546_v33  ;;  %v1419_v47 = vand.u32 2147483648, %v1407_v32  ;;  %v1417_v49 = vand.u32 2147483647, %v1407_v32 }
 0xb33   :  { %vm1413_vm15 = vweird.f32 %v1407_v32 }
 0xb34   :  { %2903 = vpow2.f32 %v1613_v35  ;;  %v1420_v52 = vor.u32 1.1754944e-38, %v1419_v47  ;;  %vm1418_vm4 = vcmp.eq.f32.partialorder %v1417_v49, 8.507059e+37 }
 0xb38   :  { %v2902_v37 = vpop.eup %2901 }
 0xb39   :  { %v1409_v39 = vmul.f32 %v2902_v37, %v1407_v32  ;;  %vm1414_vm14 = vweird.f32 %v2902_v37 }
 0xb3a   :  { %v3221_v41 = vpop.eup %2903  ;;  %vm1415_vm3 = vmor %vm1413_vm15, %vm1414_vm14 }
 0xb3b   :  { %v1410_v43 = vsub.f32 1.0, %v1409_v39  ;;  %v1615_v44 = vsel %vm479_vm2, %v3221_v41, 0.0 }
 0xb3c   :  { %1616 = vadd.xlane.f32.xlu1 %v1615_v44 }
 0xb3d   :  { %v1411_v48 = vmul.f32 %v2902_v37, %v1410_v43 }
 0xb3f   :  { %v1412_v51 = vadd.f32 %v2902_v37, %v1411_v48 }
 0xb40   :  { %1496 = vrot.lane.b32.xlu0 %v1495_v50, %s3053_s2 }
 0xb41   :  { %v1416_v46 = vsel %vm1415_vm3, %v2902_v37, %v1412_v51  ;;  %v2831_v51 = vld [vmem:[#allocation5 + $0x2f0] sm:$0xf0] }
 0xb42   :  { %v1421_v31 = vsel %vm1418_vm4, %v1420_v52, %v1416_v46  ;;  %v2586_v52 = vld [vmem:[#allocation5 + $0x2ac] sm:$0xf] }
 0xb43   :  { %v1422_v45 = vmul.f32 %v2896_v17, %v1421_v31  ;;  %v2830_v31 = vld [vmem:[#allocation5 + $0x2c0] sm:$0xf0] }
 0xb45   :  { %v1423_v54 = vpack.c.bf16 %v1422_v45, %v1422_v45  ;;  %v2587_v45 = vor.u32 %v2830_v31, %v2586_v52  ;;  %v2839_v31 = vld [vmem:[#allocation5 + $0x234] sm:$0xf0] }
 0xb47   :  { %2553 = vmatmul.msk.bf16.vlgmr.msra.gmra.mxu3 %vm479_vm2, %v1423_v54  ;;  %v2582_v54 = vld [vmem:[#allocation5 + $0x27c] sm:$0xf] }
 0xb4a   :  { %1565 = vrot.lane.b32.xlu2 %v1495_v50, %s3050_s7 }
 0xb55   :  { %1634 = vrot.lane.b32.xlu1 %v1495_v50, %s3054_s3  ;;  %v2590_v50 = vld [vmem:[#allocation5 + $0x2dc] sm:$0xf] }
 0xb56   :  { %v2591_v46 = vor.u32 %v2831_v51, %v2590_v50  ;;  %v2628_v51 = vld [vmem:[#allocation5 + $0x268] sm:$0xf0] }
 0xb58   :  { %1736 = vmatpush.bf16.msra.mxu2 %v2591_v46  ;;  %v2618_v46 = vld [vmem:[#allocation5 + $0x220] sm:$0xf] }
 0xb5c   :  { %1737 = vmatpush.bf16.msra.mxu2 %v2587_v45  ;;  %v2838_v45 = vld [vmem:[#allocation5 + $0x224] sm:$0xf] }
 0xb9f   :  { %v1476_v55 = vpop.xlane.xlu0 %1475 }
 0xba0   :  { %2905 = vrcp.f32 %v1476_v55  ;;  %v1488_v59 = vand.u32 2147483648, %v1476_v55  ;;  %v1486_v61 = vand.u32 2147483647, %v1476_v55  ;;  %vm1482_vm8 = vweird.f32 %v1476_v55 }
 0xba2   :  { %v1489_v1 = vor.u32 1.1754944e-38, %v1488_v59  ;;  %vm1487_vm10 = vcmp.eq.f32.partialorder %v1486_v61, 8.507059e+37  ;;  %v2574_v59 = vld [vmem:[#allocation5 + $0x21c] sm:$0xf] }
 0xba5   :  { %v1548_v53 = vpop.xlane.xlu2 %1547 }
 0xba6   :  { %v2906_v56 = vpop.eup %2905  ;;  %2907 = vrcp.f32 %v1548_v53  ;;  %v1560_v7 = vand.u32 2147483648, %v1548_v53  ;;  %v1558_v10 = vand.u32 2147483647, %v1548_v53  ;;  %vm1554_vm12 = vweird.f32 %v1548_v53 }
 0xba7   :  { %v1478_v57 = vmul.f32 %v2906_v56, %v1476_v55  ;;  %vm1483_vm5 = vweird.f32 %v2906_v56  ;;  %v2829_v55 = vld [vmem:[#allocation5 + $0x290] sm:$0xf0] }
 0xba8   :  { %vm1484_vm9 = vmor %vm1482_vm8, %vm1483_vm5  ;;  %v1561_v14 = vor.u32 1.1754944e-38, %v1560_v7  ;;  %vm1559_vm14 = vcmp.eq.f32.partialorder %v1558_v10, 8.507059e+37 }
 0xba9   :  { %v1479_v58 = vsub.f32 1.0, %v1478_v57  ;;  %v2828_v57 = vld [vmem:[#allocation5 + $0x260] sm:$0xf0] }
 0xbab   :  { %v1480_v60 = vmul.f32 %v2906_v56, %v1479_v58 }
 0xbac   :  { %v2908_v62 = vpop.eup %2907 }
 0xbad   :  { %v1481_v63 = vadd.f32 %v2906_v56, %v1480_v60  ;;  %v1550_v0 = vmul.f32 %v2908_v62, %v1548_v53  ;;  %v1566_v38 = vpop.permute.xlu2 %1565  ;;  %vm1555_vm11 = vweird.f32 %v2908_v62  ;;  %v2583_v53 = vor.u32 %v2829_v55, %v2582_v54  ;;  %v2827_v60 = vld [vmem:[#allocation5 + $0x230] sm:$0xf0]  ;;  %v2620_v55 = vld [vmem:[#allocation5 + $0x238] sm:$0xf0] }
 0xbae   :  { %v1571_v2 = vsel %vm508_vm0, %v1566_v38, 0  ;;  %vm1556_vm13 = vmor %vm1554_vm12, %vm1555_vm11  ;;  %v2575_v61 = vor.u32 %v2827_v60, %v2574_v59  ;;  %v2566_v38 = vld [vmem:[#allocation5 + $0x1bc] sm:$0xf]  ;;  %v2619_v54 = vor.u32 %v2839_v31, %v2618_v46  ;;  %v2612_v60 = vld [vmem:[#allocation5 + $0x208] sm:$0xf0] }
 0xbaf   :  { %v1485_v3 = vsel %vm1484_vm9, %v2906_v56, %v1481_v63  ;;  %v1551_v4 = vsub.f32 1.0, %v1550_v0  ;;  %v1617_v5 = vpop.xlane.xlu1 %1616  ;;  %1580 = vmatpush.bf16.msrb.mxu3 %v1571_v2  ;;  %v2578_v56 = vld [vmem:[#allocation5 + $0x24c] sm:$0xf]  ;;  %1738 = vmatpush.bf16.msra.mxu2 %v2583_v53  ;;  %v2826_v63 = vld [vmem:[#allocation5 + $0x200] sm:$0xf0]  ;;  %v2623_v53 = vor.u32 %v2838_v45, %v2620_v55 }
 0xbb0   :  { %v1490_v6 = vsel %vm1487_vm10, %v1489_v1, %v1485_v3  ;;  %2909 = vrcp.f32 %v1617_v5  ;;  %vm1623_vm3 = vweird.f32 %v1617_v5  ;;  %v1627_v30 = vand.u32 2147483647, %v1617_v5  ;;  %v2825_v1 = vld [vmem:[#allocation5 + $0x1d0] sm:$0xf0]  ;;  %v2562_v3 = vld [vmem:[#allocation5 + $0x18c] sm:$0xf] }
 0xbb1   :  { %v1491_v8 = vmul.f32 %v3213_v26, %v1490_v6  ;;  %v1552_v9 = vmul.f32 %v2908_v62, %v1551_v4  ;;  %v1629_v26 = vand.u32 2147483648, %v1617_v5  ;;  %v2579_v58 = vor.u32 %v2828_v57, %v2578_v56  ;;  %v2824_v4 = vld [vmem:[#allocation5 + $0x1a0] sm:$0xf0]  ;;  %v2610_v56 = vld [vmem:[#allocation5 + $0x1f0] sm:$0xf] }
 0xbb2   :  { %v1497_v11 = vpop.permute.xlu0 %1496  ;;  %vm1628_vm5 = vcmp.eq.f32.partialorder %v1627_v30, 8.507059e+37  ;;  %v2567_v2 = vor.u32 %v2825_v1, %v2566_v38  ;;  %v2837_v57 = vld [vmem:[#allocation5 + $0x204] sm:$0xf0]  ;;  %v2604_v1 = vld [vmem:[#allocation5 + $0x1d8] sm:$0xf0] }
 0xbb3   :  { %v1553_v12 = vadd.f32 %v2908_v62, %v1552_v9  ;;  %v1502_v13 = vsel %vm508_vm0, %v1497_v11, 0  ;;  %v1492_v17 = vpack.c.bf16 %v1491_v8, %v1491_v8  ;;  %v1630_v29 = vor.u32 1.1754944e-38, %v1629_v26  ;;  %1739 = vmatpush.bf16.msra.mxu2 %v2579_v58  ;;  %v2836_v58 = vld [vmem:[#allocation5 + $0x1f4] sm:$0xf] }
 0xbb4   :  { %1511 = vmatpush.bf16.msra.mxu1 %v1502_v13  ;;  %v1687_v13 = vperm.slane %v3186_v42, 1  ;;  %v2611_v59 = vor.u32 %v2837_v57, %v2610_v56  ;;  %v1936_v57 = vperm.slane %v3186_v42, 2 }
 0xbb5   :  { %v1557_v16 = vsel %vm1556_vm13, %v2908_v62, %v1553_v12  ;;  %v2570_v62 = vld [vmem:[#allocation5 + $0x1ec] sm:$0xf] }
 0xbb6   :  { %v2910_v18 = vpop.eup %2909  ;;  %v1562_v19 = vsel %vm1559_vm14, %v1561_v14, %v1557_v16  ;;  %v2571_v0 = vor.u32 %v2826_v63, %v2570_v62  ;;  %v2602_v62 = vld [vmem:[#allocation5 + $0x1c0] sm:$0xf]  ;;  %v2835_v63 = vld [vmem:[#allocation5 + $0x1d4] sm:$0xf0] }
 0xbb7   :  { %v1563_v20 = vmul.f32 %v3217_v28, %v1562_v19  ;;  %v1619_v21 = vmul.f32 %v2910_v18, %v1617_v5  ;;  %2555 = vmatmul.msk.bf16.vlgmr.msra.gmra.mxu1 %vm479_vm2, %v1492_v17  ;;  %vm1624_vm15 = vweird.f32 %v2910_v18  ;;  %1740 = vmatpush.bf16.msra.mxu2 %v2575_v61  ;;  %v2563_v5 = vor.u32 %v2824_v4, %v2562_v3  ;;  %v2650_v19 = vld [vmem:[#allocation5 + $0x2e0] sm:$0xf]  ;;  %v2833_v3 = vld [vmem:[#allocation5 + $0x1a4] sm:$0xf0] }
 0xbb8   :  { %vm1625_vm4 = vmor %vm1623_vm3, %vm1624_vm15  ;;  %v2615_v61 = vor.u32 %v2836_v58, %v2612_v60  ;;  %v2603_v38 = vor.u32 %v2835_v63, %v2602_v62 }
 0xbb9   :  { %v1620_v22 = vsub.f32 1.0, %v1619_v21  ;;  %v1564_v23 = vpack.c.bf16 %v1563_v20, %v1563_v20  ;;  %v2847_v20 = vld [vmem:[#allocation5 + $0x2f4] sm:$0xf0]  ;;  %v2846_v21 = vld [vmem:[#allocation5 + $0x2e4] sm:$0xf] }
 0xbbb   :  { %v1621_v24 = vmul.f32 %v2910_v18, %v1620_v22  ;;  %2557 = vmatmul.msk.bf16.vlgmr.msrb.gmra.mxu3 %vm479_vm2, %v1564_v23  ;;  %1741 = vmatpush.bf16.msra.mxu2 %v2571_v0  ;;  %v2651_v22 = vor.u32 %v2847_v20, %v2650_v19  ;;  %v2652_v23 = vld [vmem:[#allocation5 + $0x2f8] sm:$0xf0]  ;;  %v2834_v0 = vld [vmem:[#allocation5 + $0x1c4] sm:$0xf] }
 0xbbc   :  { %v2607_v4 = vor.u32 %v2834_v0, %v2604_v1  ;;  %v2860_v19 = vld [vmem:[#allocation7 + $0xe0] sm:$0xff] }
 0xbbd   :  { %v1622_v25 = vadd.f32 %v2910_v18, %v1621_v24  ;;  %v2655_v24 = vor.u32 %v2846_v21, %v2652_v23  ;;  %1873 = vmatpush.bf16.msra.mxu3 %v2651_v22  ;;  %v2852_v20 = vld [vmem:[#allocation7 + $0xa0] sm:$0xff]  ;;  %v2859_v23 = vld [vmem:[#allocation7 + $0xd8] sm:$0xff] }
 0xbbf   :  { %v1626_v27 = vsel %vm1625_vm4, %v2910_v18, %v1622_v25  ;;  %1742 = vmatpush.bf16.msra.mxu2 %v2567_v2  ;;  %1886 = vmatpush.bf16.msrb.mxu0 %v2655_v24  ;;  %v2594_v2 = vld [vmem:[#allocation5 + $0x190] sm:$0xf]  ;;  %v2851_v24 = vld [vmem:[#allocation7 + $0x98] sm:$0xff] }
 0xbc0   :  { %v1631_v32 = vsel %vm1628_vm5, %v1630_v29, %v1626_v27  ;;  %v2642_v29 = vld [vmem:[#allocation5 + $0x2b0] sm:$0xf] }
 0xbc1   :  { %v1632_v28 = vmul.f32 %v3221_v41, %v1631_v32  ;;  %v2844_v32 = vld [vmem:[#allocation5 + $0x2b4] sm:$0xf] }
 0xbc3   :  { %v1633_v39 = vpack.c.bf16 %v1632_v28, %v1632_v28  ;;  %1743 = vmatpush.bf16.msra.mxu2 %v2563_v5  ;;  %v2832_v5 = vld [vmem:[#allocation5 + $0x194] sm:$0xf] }
 0xbc7   :  { %v1635_v33 = vpop.permute.xlu1 %1634 }
 0xbc8   :  { %v1640_v35 = vsel %vm508_vm0, %v1635_v33, 0  ;;  %v2644_v33 = vld [vmem:[#allocation5 + $0x2c8] sm:$0xf0] }
 0xbc9   :  { %1649 = vmatpush.bf16.msrb.mxu1 %v1640_v35  ;;  %v2647_v35 = vor.u32 %v2844_v32, %v2644_v33  ;;  %v1770_v32 = vperm.slane %v3184_v40, 2  ;;  %v1772_v33 = vperm.slane %v3181_v36, 2 }
 0xbca   :  { %v1439_v37 = vpop.f32.mrf.mxu3 }
 0xbcb   :  { %1887 = vmatpush.bf16.msrb.mxu0 %v2647_v35 }
 0xbcc   :  { %2559 = vmatmul.msk.bf16.vlgmr.msrb.gmra.mxu1 %vm479_vm2, %v1633_v39  ;;  %v2843_v39 = vld [vmem:[#allocation5 + $0x294] sm:$0xf0] }
 0xbd2   :  { %v1441_v15 = vpop.f32.mrf.mxu3 }
 0xbd3   :  { %v2842_v15 = vld [vmem:[#allocation5 + $0x284] sm:$0xf] }
 0xc34   :  { %v1513_v43 = vpop.f32.mrf.mxu1 }
 0xc35   :  { %1656 = vrot.lane.b32.xlu0 %v1513_v43, %s3054_s3 }
 0xc3c   :  { %v1515_v44 = vpop.f32.mrf.mxu1 }
 0xc3d   :  { %v2636_v44 = vld [vmem:[#allocation5 + $0x298] sm:$0xf0] }
 0xc3e   :  { %v1582_v47 = vpop.f32.mrf.mxu3 }
 0xc3f   :  { %1660 = vrot.lane.b32.xlu2 %v1582_v47, %s3050_s7  ;;  %v2639_v47 = vor.u32 %v2842_v15, %v2636_v44  ;;  %v2850_v44 = vld [vmem:[#allocation7 + $0x90] sm:$0xff] }
 0xc41   :  { %1888 = vmatpush.bf16.msrb.mxu0 %v2639_v47  ;;  %v2856_v47 = vld [vmem:[#allocation7 + $0xc0] sm:$0xff] }
 0xc46   :  { %v1584_v48 = vpop.f32.mrf.mxu3 }
 0xc47   :  { %v2626_v48 = vld [vmem:[#allocation5 + $0x250] sm:$0xf] }
 0xc49   :  { %v1651_v49 = vpop.f32.mrf.mxu1 }
 0xc4a   :  { %1664 = vrot.lane.b32.xlu0 %v1651_v49, %s3053_s2  ;;  %v2841_v49 = vld [vmem:[#allocation5 + $0x264] sm:$0xf0] }
 0xc4b   :  { %v2627_v50 = vor.u32 %v2841_v49, %v2626_v48  ;;  %v2849_v48 = vld [vmem:[#allocation7 + $0x88] sm:$0xff]  ;;  %v2848_v49 = vld [vmem:[#allocation7 + $0x80] sm:$0xff] }
 0xc51   :  { %v1653_v41 = vpop.f32.mrf.mxu1 }
 0xc52   :  { %v2840_v41 = vld [vmem:[#allocation5 + $0x254] sm:$0xf] }
 0xc53   :  { %v2631_v52 = vor.u32 %v2840_v41, %v2628_v51  ;;  %v1792_v41 = vperm.slane %v3181_v36, 1 }
 0xc55   :  { %1889 = vmatpush.bf16.msrb.mxu0 %v2631_v52  ;;  %v1791_v52 = vperm.slane %v3184_v40, 1 }
 0xc59   :  { %1890 = vmatpush.bf16.msrb.mxu0 %v2623_v53 }
 0xc5d   :  { %1891 = vmatpush.bf16.msrb.mxu0 %v2615_v61 }
 0xc61   :  { %1892 = vmatpush.bf16.msrb.mxu0 %v2607_v4 }
 0xc99   :  { %v1661_v8 = vpop.permute.xlu2 %1660 }
 0xca7   :  { %v1657_v6 = vpop.permute.xlu0 %1656 }
 0xca8   :  { %v1667_v7 = vsel %vm459_vm1, %v1439_v37, %v1657_v6  ;;  %v2634_v37 = vld [vmem:[#allocation5 + $0x280] sm:$0xf]  ;;  %v2596_v6 = vld [vmem:[#allocation5 + $0x1a8] sm:$0xf0] }
 0xca9   :  { %v1668_v9 = vsel %vm750_vm6, %v1667_v7, %v1661_v8  ;;  %v2635_v43 = vor.u32 %v2843_v39, %v2634_v37  ;;  %v2595_v7 = vor.u32 %v2833_v3, %v2594_v2  ;;  %v2599_v8 = vor.u32 %v2832_v5, %v2596_v6 }
 0xcab   :  { %1893 = vmatpush.bf16.msrb.mxu0 %v2599_v8 }
 0xcbc   :  { %v1665_v10 = vpop.permute.xlu0 %1664 }
 0xcbd   :  { %v1669_v11 = vsel %vm752_vm7, %v1668_v9, %v1665_v10  ;;  %v2863_v9 = vld [vmem:[#allocation7 + $0xf8] sm:$0xff] }
 0xcbe   :  { %v1670_v12 = vpack.c.bf16 %v1669_v11, %v1669_v11  ;;  %v2855_v10 = vld [vmem:[#allocation7 + $0xb8] sm:$0xff]  ;;  %2046 = vmatpush.bf16.msrb.mxu2 %v2863_v9 }
 0xcbf   :  { %2033 = vmatpush.bf16.msra.mxu1 %v2855_v10 }
 0xcc0   :  { %1744 = vmatmul.bf16.vlgmr.msra.gmra.mxu2 %v1670_v12 }
 0xd43   :  { %v1745_v14 = vpop.f32.mrf.mxu2 }
 0xd44   :  { %v1746_v16 = vadd.f32 %v1745_v14, %v1687_v13  ;;  %v2862_v13 = vld [vmem:[#allocation7 + $0xf0] sm:$0xff] }
 0xd45   :  { %v2854_v14 = vld [vmem:[#allocation7 + $0xb0] sm:$0xff]  ;;  %2047 = vmatpush.bf16.msrb.mxu2 %v2862_v13 }
 0xd46   :  { %v1749_v17 = vadd.f32 %v1746_v16, %v3177_v34  ;;  %v2845_v34 = vld [vmem:[#allocation5 + $0x2c4] sm:$0xf0]  ;;  %2034 = vmatpush.bf16.msra.mxu1 %v2854_v14 }
 0xd47   :  { %v2643_v28 = vor.u32 %v2845_v34, %v2642_v29 }
 0xd48   :  { %1750 = vadd.xlane.f32.xlu1 %v1749_v17 }
 0xd49   :  { %1874 = vmatpush.bf16.msra.mxu3 %v2643_v28 }
 0xd4b   :  { %v1747_v18 = vpop.f32.mrf.mxu2 }
 0xd4c   :  { %v2853_v18 = vld [vmem:[#allocation7 + $0xa8] sm:$0xff] }
 0xd4d   :  { %1875 = vmatpush.bf16.msra.mxu3 %v2635_v43  ;;  %2035 = vmatpush.bf16.msra.mxu1 %v2853_v18  ;;  %v2857_v43 = vld [vmem:[#allocation7 + $0xc8] sm:$0xff] }
 0xd51   :  { %1876 = vmatpush.bf16.msra.mxu3 %v2627_v50  ;;  %2036 = vmatpush.bf16.msra.mxu1 %v2852_v20 }
 0xd55   :  { %1877 = vmatpush.bf16.msra.mxu3 %v2619_v54  ;;  %2037 = vmatpush.bf16.msra.mxu1 %v2851_v24 }
 0xd59   :  { %1878 = vmatpush.bf16.msra.mxu3 %v2611_v59  ;;  %2038 = vmatpush.bf16.msra.mxu1 %v2850_v44 }
 0xd5d   :  { %1879 = vmatpush.bf16.msra.mxu3 %v2603_v38  ;;  %2039 = vmatpush.bf16.msra.mxu1 %v2849_v48 }
 0xd61   :  { %1880 = vmatpush.bf16.msra.mxu3 %v2595_v7  ;;  %2040 = vmatpush.bf16.msra.mxu1 %v2848_v49 }
 0xdbb   :  { %v1751_v25 = vpop.xlane.xlu1 %1750 }
 0xdbc   :  { %v1752_v26 = vmul.f32 0.0078125, %v1751_v25 }
 0xdbe   :  { %v3247_v30 = vsub.f32 %v1749_v17, %v1752_v26  ;;  %v2861_v17 = vld [vmem:[#allocation7 + $0xe8] sm:$0xff] }
 0xdbf   :  { %2048 = vmatpush.bf16.msrb.mxu2 %v2861_v17 }
 0xdc0   :  { %v1754_v27 = vmul.f32 %v3247_v30, %v3247_v30 }
 0xdc2   :  { %1755 = vadd.xlane.f32.xlu2 %v1754_v27  ;;  %v2858_v27 = vld [vmem:[#allocation7 + $0xd0] sm:$0xff] }
 0xdc3   :  { %2049 = vmatpush.bf16.msrb.mxu2 %v2860_v19 }
 0xdc7   :  { %2050 = vmatpush.bf16.msrb.mxu2 %v2859_v23 }
 0xdcb   :  { %2051 = vmatpush.bf16.msrb.mxu2 %v2858_v27 }
 0xdcf   :  { %2052 = vmatpush.bf16.msrb.mxu2 %v2857_v43 }
 0xdd3   :  { %2053 = vmatpush.bf16.msrb.mxu2 %v2856_v47 }
 0xe35   :  { %v1756_v11 = vpop.xlane.xlu2 %1755 }
 0xe36   :  { %v1757_v12 = vmul.f32 0.0078125, %v1756_v11 }
 0xe38   :  { %v1758_v16 = vadd.f32 1e-05, %v1757_v12  ;;  %v2080_v12 = vperm.slane %v3186_v42, 3 }
 0xe3a   :  { %2911 = vrsqrt.f32 %v1758_v16  ;;  %vm1765_vm1 = vweird.f32 %v1758_v16 }
 0xe40   :  { %v2912_v21 = vpop.eup %2911 }
 0xe41   :  { %v1760_v22 = vmul.f32 %v2912_v21, %v1758_v16  ;;  %vm1766_vm0 = vweird.f32 %v2912_v21  ;;  %v2082_v16 = vperm.slane %v3184_v40, 3 }
 0xe42   :  { %vm1767_vm2 = vmor %vm1765_vm1, %vm1766_vm0 }
 0xe43   :  { %v1761_v25 = vmul.f32 %v2912_v21, %v1760_v22 }
 0xe45   :  { %v1762_v26 = vmul.f32 0.5, %v1761_v25 }
 0xe47   :  { %v1763_v29 = vsub.f32 1.5, %v1762_v26 }
 0xe49   :  { %v1764_v34 = vmul.f32 %v2912_v21, %v1763_v29 }
 0xe4b   :  { %v1768_v28 = vsel %vm1767_vm2, %v2912_v21, %v1764_v34 }
 0xe4c   :  { %v1769_v35 = vmul.f32 %v1768_v28, %v3247_v30  ;;  %v83_v28 = vld [vmem:[#allocation8 + $0x40] sm:$0xff] }
 0xe4e   :  { %v1771_v37 = vmul.f32 %v1770_v32, %v1769_v35  ;;  %v82_v32 = vld [vmem:[#allocation8 + $0x38] sm:$0xff] }
 0xe50   :  { %v1773_v39 = vadd.f32 %v1772_v33, %v1771_v37  ;;  %v2104_v33 = vperm.slane %v82_v32, 0 }
 0xe52   :  { %v1774_v15 = vpack.c.bf16 %v1773_v39, %v1773_v39 }
 0xe54   :  { %1881 = vmatmul.bf16.vlgmr.msra.gmra.mxu3 %v1774_v15  ;;  %1894 = vmatmul.bf16.vlgmr.msrb.gmra.mxu0 %v1774_v15 }
 0xed1   :  { %v1895_v50 = vpop.f32.mrf.mxu0 }
 0xed2   :  { %v1896_v51 = vadd.f32 %v1895_v50, %v1792_v41 }
 0xed4   :  { %v1900_v30 = vmax.f32 %v1896_v51, 0.0 }
 0xed6   :  { %v1902_v46 = vpack.c.bf16 %v1900_v30, %v1900_v30 }
 0xed7   :  { %v1882_v31 = vpop.f32.mrf.mxu3 }
 0xed8   :  { %v1883_v45 = vadd.f32 %v1882_v31, %v1791_v52  ;;  %2054 = vmatmul.bf16.vlgmr.msrb.gmra.mxu2 %v1902_v46 }
 0xed9   :  { %v1897_v54 = vpop.f32.mrf.mxu0 }
 0xeda   :  { %v1899_v55 = vmax.f32 %v1883_v45, 0.0 }
 0xedc   :  { %v1901_v53 = vpack.c.bf16 %v1899_v55, %v1899_v55 }
 0xede   :  { %2041 = vmatmul.bf16.vlgmr.msra.gmra.mxu1 %v1901_v53 }
 0xedf   :  { %v1884_v56 = vpop.f32.mrf.mxu3 }
 0xf5b   :  { %v2042_v58 = vpop.f32.mrf.mxu1  ;;  %v2055_v59 = vpop.f32.mrf.mxu2 }
 0xf5c   :  { %v2043_v60 = vadd.f32 %v2042_v58, %v1936_v57 }
 0xf5e   :  { %v2056_v36 = vadd.f32 %v2055_v59, %v2043_v60 }
 0xf60   :  { %v2059_v61 = vadd.f32 %v2056_v36, %v1773_v39  ;;  %v2106_v39 = vperm.slane %v83_v28, 0 }
 0xf62   :  { %2060 = vadd.xlane.f32.xlu0 %v2059_v61 }
 0xf63   :  { %v2044_v62 = vpop.f32.mrf.mxu1  ;;  %v2057_v63 = vpop.f32.mrf.mxu2 }
 0xfd5   :  { %v2061_v0 = vpop.xlane.xlu0 %2060 }
 0xfd6   :  { %v2062_v38 = vmul.f32 0.0078125, %v2061_v0 }
 0xfd8   :  { %v2063_v1 = vsub.f32 %v2059_v61, %v2062_v38 }
 0xfda   :  { %v2064_v2 = vmul.f32 %v2063_v1, %v2063_v1 }
 0xfdc   :  { %2065 = vadd.xlane.f32.xlu1 %v2064_v2 }
0x104f   :  { %v2066_v3 = vpop.xlane.xlu1 %2065 }
0x1050   :  { %v2067_v4 = vmul.f32 0.0078125, %v2066_v3 }
0x1052   :  { %v2068_v5 = vadd.f32 1e-05, %v2067_v4 }
0x1054   :  { %2913 = vrsqrt.f32 %v2068_v5  ;;  %vm2075_vm7 = vweird.f32 %v2068_v5 }
0x105a   :  { %v2914_v6 = vpop.eup %2913 }
0x105b   :  { %v2070_v7 = vmul.f32 %v2914_v6, %v2068_v5  ;;  %vm2076_vm6 = vweird.f32 %v2914_v6 }
0x105c   :  { %vm2077_vm8 = vmor %vm2075_vm7, %vm2076_vm6 }
0x105d   :  { %v2071_v8 = vmul.f32 %v2914_v6, %v2070_v7 }
0x105f   :  { %v2072_v9 = vmul.f32 0.5, %v2071_v8 }
0x1061   :  { %v2073_v10 = vsub.f32 1.5, %v2072_v9 }
0x1063   :  { %v2074_v11 = vmul.f32 %v2914_v6, %v2073_v10 }
0x1065   :  { %v2078_v13 = vsel %vm2077_vm8, %v2914_v6, %v2074_v11 }
0x1066   :  { %v2079_v14 = vmul.f32 %v2078_v13, %v2063_v1 }
0x1068   :  { %v2081_v17 = vmul.f32 %v2080_v12, %v2079_v14 }
0x106a   :  { %v2083_v18 = vadd.f32 %v2082_v16, %v2081_v17 }
0x106c   :  { %2084 = vadd.xlane.f32.xlu2 %v2083_v18 }
0x10df   :  { %v2085_v19 = vpop.xlane.xlu2 %2084 }
0x10e0   :  { %v2086_v20 = vmul.f32 0.0078125, %v2085_v19 }
0x10e2   :  { %v2087_v21 = vsub.f32 %v2083_v18, %v2086_v20 }
0x10e4   :  { %v2088_v22 = vmul.f32 %v2087_v21, %v2087_v21 }
0x10e6   :  { %2089 = vadd.xlane.f32.xlu0 %v2088_v22 }
0x1159   :  { %v2090_v23 = vpop.xlane.xlu0 %2089 }
0x115a   :  { %v2091_v24 = vmul.f32 0.0078125, %v2090_v23 }
0x115c   :  { %v2092_v25 = vadd.f32 1e-05, %v2091_v24 }
0x115e   :  { %2915 = vrsqrt.f32 %v2092_v25  ;;  %vm2099_vm10 = vweird.f32 %v2092_v25 }
0x1164   :  { %v2916_v26 = vpop.eup %2915 }
0x1165   :  { %v2094_v27 = vmul.f32 %v2916_v26, %v2092_v25  ;;  %vm2100_vm9 = vweird.f32 %v2916_v26 }
0x1166   :  { %vm2101_vm11 = vmor %vm2099_vm10, %vm2100_vm9 }
0x1167   :  { %v2095_v29 = vmul.f32 %v2916_v26, %v2094_v27 }
0x1169   :  { %v2096_v42 = vmul.f32 0.5, %v2095_v29 }
0x116b   :  { %v2097_v34 = vsub.f32 1.5, %v2096_v42 }
0x116d   :  { %v2098_v40 = vmul.f32 %v2916_v26, %v2097_v34 }
0x116f   :  { %v2102_v35 = vsel %vm2101_vm11, %v2916_v26, %v2098_v40 }
0x1170   :  { %v2103_v37 = vmul.f32 %v2102_v35, %v2087_v21 }
0x1172   :  { %v2105_v15 = vmul.f32 %v2104_v33, %v2103_v37 }
0x1174   :  { %v2107_v43 = vadd.f32 %v2106_v39, %v2105_v15 }
0x1176   :  { %2108 = vst [vmem:[#allocation10] sm:$0xff] %v2107_v43 }
0x1177   :  { %2119 = dma.vmem_to_hbm [thread:$0]  %s2115_s12, 128, %s2117_s15, [#allocation4]  }
0x1178   :  { %3043 = dma.done.wait [#allocation4], 128  }
0x1179   :  { %3044 = vsyncadd [#allocation4], 4294967168 }
0x117a   :  { %2124 = vsyncpa [#allocation3], 1 }
0x117b   :  { %2125 = vsyncpa [#allocation6], 1 }
0x117c   :  { %2126 = vsyncpa [#allocation9], 1 }
0x117d   :  { %2127 = vsyncpa [#allocation4], 1 }

</bundles_post_ra>
